<compile_context>
chip_gen: v5e
topology: v5e:2x2
jax: 0.10.0
libtpu: 0.0.40
codegen_flags: <defaults>
</compile_context>

<pallas_src>
import functools

import jax
import jax.numpy as jnp
from jax.experimental import pallas as pl
from jax.experimental.pallas import tpu as pltpu


# 32 MiB scoped-VMEM budget: <= physical VMEM on every generation
# (v5e/v6e: 128 MiB, v7x: 64 MiB) and enough for the tile sizes chosen below.
_VMEM_LIMIT_BYTES = 32 * 1024 * 1024


def _round_up(n, m):
    return (n + m - 1) // m * m


def _pick_row_tile(rows, max_tile):
    """Largest row tile <= max_tile (multiple of 8 sublanes)."""
    if rows >= max_tile:
        return max_tile
    return _round_up(rows, 8)


def _pick_col_tile(cols):
    """Lane-dense output-column tile: multiple of 256 (v6e/v7x MXU), else 128
    (v5e MXU), else the full dimension (allowed when block == array dim)."""
    for t in (512, 256, 128):
        if cols % t == 0:
            return t
    return cols


# ----------------------------------------------------------------------------
# Fused PreNorm + Linear kernel
# ----------------------------------------------------------------------------
def _prenorm_linear_kernel(x_ref, g_ref, b_ref, w_ref, bias_ref, o_ref,
                           xn_ref, *, eps):
    # Grid: (i over row tiles ["parallel"], j over output-col tiles ["arbitrary"]).
    # Normalize the (tm, D) LHS tile once at j == 0 into VMEM scratch, then
    # reuse it for every output-column tile of this row tile.
    @pl.when(pl.program_id(1) == 0)
    def _():
        x = x_ref[...].astype(jnp.float32)
        # Single reduction pass, f32 accumulation: var = E[x^2] - mean^2.
        mean = jnp.mean(x, axis=-1, keepdims=True)
        mean_sq = jnp.mean(x * x, axis=-1, keepdims=True)
        var = jnp.maximum(mean_sq - mean * mean, 0.0)
        inv = jax.lax.rsqrt(var + eps)
        y = (x - mean) * inv
        y = y * g_ref[...].astype(jnp.float32) + b_ref[...].astype(jnp.float32)
        xn_ref[...] = y.astype(xn_ref.dtype)

    # MXU matmul in the weights' native dtype (bf16 weights -> bf16 MXU path),
    # f32 accumulation.
    acc = jnp.dot(xn_ref[...], w_ref[...], preferred_element_type=jnp.float32)
    o_ref[...] = (acc + bias_ref[...].astype(jnp.float32)).astype(o_ref.dtype)


def prenorm_linear_pallas(x, gamma, beta, w, b, *, eps=1e-5,
                          row_tile_max=256, out_dtype=None):
    """fn(LayerNorm(x)) with fn = Linear(w, b), fused into one Pallas kernel.

    x: (..., D), w: (D, H), b: (H,)  ->  (..., H)
    """
    orig_shape = x.shape
    d_in = orig_shape[-1]
    d_out = w.shape[1]
    out_dtype = out_dtype or x.dtype

    x2 = x.reshape(-1, d_in)
    rows = x2.shape[0]
    tm = _pick_row_tile(rows, row_tile_max)
    rows_p = _round_up(rows, tm)
    if rows_p != rows:
        # Pad ragged row counts (zeros normalize to beta; padded rows are sliced off).
        x2 = jnp.pad(x2, ((0, rows_p - rows), (0, 0)))
    tn = _pick_col_tile(d_out)

    g2 = gamma.reshape(1, d_in)
    b2 = beta.reshape(1, d_in)
    bias2 = b.reshape(1, d_out)

    out = pl.pallas_call(
        functools.partial(_prenorm_linear_kernel, eps=eps),
        out_shape=jax.ShapeDtypeStruct((rows_p, d_out), out_dtype),
        grid_spec=pltpu.PrefetchScalarGridSpec(
            num_scalar_prefetch=0,
            grid=(rows_p // tm, d_out // tn),
            in_specs=[
                pl.BlockSpec((tm, d_in), lambda i, j: (i, 0)),   # x row tile
                pl.BlockSpec((1, d_in), lambda i, j: (0, 0)),    # gamma
                pl.BlockSpec((1, d_in), lambda i, j: (0, 0)),    # beta
                pl.BlockSpec((d_in, tn), lambda i, j: (0, j)),   # W col tile
                pl.BlockSpec((1, tn), lambda i, j: (0, j)),      # bias col tile
            ],
            out_specs=pl.BlockSpec((tm, tn), lambda i, j: (i, j)),
            scratch_shapes=[pltpu.VMEM((tm, d_in), w.dtype)],    # normalized LHS
        ),
        compiler_params=pltpu.CompilerParams(
            dimension_semantics=("parallel", "arbitrary"),
            vmem_limit_bytes=_VMEM_LIMIT_BYTES,
        ),
    )(x2, g2, b2, w, bias2)

    return out[:rows].reshape(orig_shape[:-1] + (d_out,))


# ----------------------------------------------------------------------------
# Standalone LayerNorm kernel (fallback when the wrapped fn is arbitrary)
# ----------------------------------------------------------------------------
def _layernorm_kernel(x_ref, g_ref, b_ref, o_ref, *, eps):
    x = x_ref[...].astype(jnp.float32)
    mean = jnp.mean(x, axis=-1, keepdims=True)
    mean_sq = jnp.mean(x * x, axis=-1, keepdims=True)
    var = jnp.maximum(mean_sq - mean * mean, 0.0)
    inv = jax.lax.rsqrt(var + eps)
    y = (x - mean) * inv
    y = y * g_ref[...].astype(jnp.float32) + b_ref[...].astype(jnp.float32)
    o_ref[...] = y.astype(o_ref.dtype)


def layernorm_pallas(x, gamma, beta, *, eps=1e-5, row_tile_max=512):
    """LayerNorm over the last axis of x (any leading dims)."""
    orig_shape = x.shape
    dim = orig_shape[-1]
    x2 = x.reshape(-1, dim)
    rows = x2.shape[0]
    tm = _pick_row_tile(rows, row_tile_max)
    rows_p = _round_up(rows, tm)
    if rows_p != rows:
        x2 = jnp.pad(x2, ((0, rows_p - rows), (0, 0)))

    g2 = gamma.reshape(1, dim)
    b2 = beta.reshape(1, dim)

    out = pl.pallas_call(
        functools.partial(_layernorm_kernel, eps=eps),
        out_shape=jax.ShapeDtypeStruct((rows_p, dim), x.dtype),
        grid_spec=pltpu.PrefetchScalarGridSpec(
            num_scalar_prefetch=0,
            grid=(rows_p // tm,),
            in_specs=[
                pl.BlockSpec((tm, dim), lambda i: (i, 0)),
                pl.BlockSpec((1, dim), lambda i: (0, 0)),
                pl.BlockSpec((1, dim), lambda i: (0, 0)),
            ],
            out_specs=pl.BlockSpec((tm, dim), lambda i: (i, 0)),
        ),
        compiler_params=pltpu.CompilerParams(
            dimension_semantics=("parallel",),
            vmem_limit_bytes=_VMEM_LIMIT_BYTES,
        ),
    )(x2, g2, b2)
    return out[:rows].reshape(orig_shape)


# ----------------------------------------------------------------------------
# Tiled / pipelined Linear kernel (used when PallasLinear is called directly)
# ----------------------------------------------------------------------------
def _linear_kernel(x_ref, w_ref, b_ref, o_ref):
    acc = jnp.dot(x_ref[...], w_ref[...], preferred_element_type=jnp.float32)
    o_ref[...] = (acc + b_ref[...].astype(jnp.float32)).astype(o_ref.dtype)


def linear_pallas(x, w, b, *, row_tile_max=256):
    """x: (..., D), w: (D, H), b: (H,) -> (..., H)."""
    orig_shape = x.shape
    d_in = orig_shape[-1]
    d_out = w.shape[1]
    x2 = x.reshape(-1, d_in)
    rows = x2.shape[0]
    tm = _pick_row_tile(rows, row_tile_max)
    rows_p = _round_up(rows, tm)
    if rows_p != rows:
        x2 = jnp.pad(x2, ((0, rows_p - rows), (0, 0)))
    tn = _pick_col_tile(d_out)
    bias2 = b.reshape(1, d_out)

    out = pl.pallas_call(
        _linear_kernel,
        out_shape=jax.ShapeDtypeStruct((rows_p, d_out), x.dtype),
        grid_spec=pltpu.PrefetchScalarGridSpec(
            num_scalar_prefetch=0,
            grid=(rows_p // tm, d_out // tn),
            in_specs=[
                pl.BlockSpec((tm, d_in), lambda i, j: (i, 0)),
                pl.BlockSpec((d_in, tn), lambda i, j: (0, j)),
                pl.BlockSpec((1, tn), lambda i, j: (0, j)),
            ],
            out_specs=pl.BlockSpec((tm, tn), lambda i, j: (i, j)),
        ),
        compiler_params=pltpu.CompilerParams(
            dimension_semantics=("parallel", "parallel"),
            vmem_limit_bytes=_VMEM_LIMIT_BYTES,
        ),
    )(x2, w, bias2)
    return out[:rows].reshape(orig_shape[:-1] + (d_out,))


# ----------------------------------------------------------------------------
# Module wrappers
# ----------------------------------------------------------------------------
class PallasLinear:
    def __init__(self, w, b):
        self.w = w
        self.b = b

    def __call__(self, x):
        return linear_pallas(x, self.w, self.b)


class PreNorm:
    """PreNorm(dim, fn): returns fn(LayerNorm(x), **kwargs).

    If fn is a PallasLinear, LayerNorm is fused into the matmul kernel
    (no HBM round trip of the normalized activations). Otherwise the
    standalone LayerNorm kernel runs and fn is applied outside.
    """

    def __init__(self, dim, fn):
        # nn.LayerNorm(dim): gamma=ones(dim), beta=zeros(dim), eps=1e-5
        self.gamma = jnp.ones((dim,), dtype=jnp.float32)
        self.beta = jnp.zeros((dim,), dtype=jnp.float32)
        self.eps = 1e-5
        self.fn = fn

    def __call__(self, x, **kwargs):
        if isinstance(self.fn, PallasLinear) and not kwargs:
            return prenorm_linear_pallas(
                x, self.gamma, self.beta, self.fn.w, self.fn.b, eps=self.eps)
        # TODO(synk): arbitrary wrapped fn stays a plain JAX call; only the
        # LayerNorm it owns runs in Pallas.
        return self.fn(layernorm_pallas(x, self.gamma, self.beta, eps=self.eps),
                       **kwargs)


if __name__ == "__main__":
    # Small but representative ViT-like shapes: lane-dense feature dims
    # (multiples of 128) and a ragged token count (197 = 14*14 patches + CLS)
    # to exercise the row-padding path.
    B, N, D, H = 2, 197, 128, 256
    key = jax.random.PRNGKey(0)
    kx, kw, kb = jax.random.split(key, 3)

    x = jax.random.normal(kx, (B, N, D), dtype=jnp.float32)
    w = jax.random.normal(kw, (D, H), dtype=jnp.float32) * 0.02
    b = jax.random.normal(kb, (H,), dtype=jnp.float32) * 0.01

    # Fused PreNorm + Linear path.
    linear = PallasLinear(w, b)
    prenorm = PreNorm(D, linear)
    out = jax.block_until_ready(prenorm(x))

    # Pure-JAX reference (LayerNorm + Linear).
    mean = jnp.mean(x, axis=-1, keepdims=True)
    var = jnp.mean((x - mean) ** 2, axis=-1, keepdims=True)
    xn = (x - mean) / jnp.sqrt(var + 1e-5)
    ref = xn @ w + b
    assert out.shape == (B, N, H)
    assert jnp.allclose(out, ref, atol=2e-4, rtol=2e-4), \
        float(jnp.max(jnp.abs(out - ref)))

    # Fallback path: arbitrary fn -> standalone LayerNorm kernel + plain JAX fn.
    prenorm_gelu = PreNorm(D, jax.nn.gelu)
    out2 = jax.block_until_ready(prenorm_gelu(x))
    ref2 = jax.nn.gelu(xn)
    assert jnp.allclose(out2, ref2, atol=2e-4, rtol=2e-4)

    # Tiled Linear kernel used standalone.
    out3 = jax.block_until_ready(linear(xn))
    assert jnp.allclose(out3, ref, atol=2e-4, rtol=2e-4)

    print("KERNEL_OK")
</pallas_src>

<mosaic_0001>
module attributes {stable_mosaic.version = 11 : i64} {
  func.func @_prenorm_linear_kernel(%arg0: i32, %arg1: i32, %arg2: memref<256x128xf32, #tpu.memory_space<vmem>>, %arg3: memref<1x128xf32, #tpu.memory_space<vmem>>, %arg4: memref<1x128xf32, #tpu.memory_space<vmem>>, %arg5: memref<128x256xf32, #tpu.memory_space<vmem>>, %arg6: memref<1x256xf32, #tpu.memory_space<vmem>>, %arg7: memref<256x256xf32, #tpu.memory_space<vmem>>, %arg8: memref<256x128xf32, #tpu.memory_space<vmem>>) attributes {dimension_semantics = [#tpu.dimension_semantics<parallel>, #tpu.dimension_semantics<arbitrary>], iteration_bounds = array<i64: 2, 1>, scalar_prefetch = 0 : i64, scratch_operands = 1 : i64, tpu.core_type = #tpu.core_type<tc>, window_params = [{transform_indices = @transform_0, window_bounds = array<i64: 256, 128>}, {pipeline_mode = #tpu.pipeline_mode<synchronous>, transform_indices = @transform_1, window_bounds = array<i64: 1, 128>}, {pipeline_mode = #tpu.pipeline_mode<synchronous>, transform_indices = @transform_2, window_bounds = array<i64: 1, 128>}, {transform_indices = @transform_3, window_bounds = array<i64: 128, 256>}, {transform_indices = @transform_4, window_bounds = array<i64: 1, 256>}, {transform_indices = @transform_5, window_bounds = array<i64: 256, 256>}]} {
    %c0_i32 = arith.constant 0 : i32
    %0 = arith.cmpi eq, %arg1, %c0_i32 : i32
    %1 = arith.extui %0 : i1 to i32
    %c0_i32_0 = arith.constant 0 : i32
    %2 = arith.cmpi ne, %1, %c0_i32_0 : i32
    scf.if %2 {
      %c0_8 = arith.constant 0 : index
      %c0_9 = arith.constant 0 : index
      %10 = vector.load %arg2[%c0_8, %c0_9] : memref<256x128xf32, #tpu.memory_space<vmem>>, vector<256x128xf32>
      %cst_10 = arith.constant dense<0.000000e+00> : vector<256xf32>
      %11 = vector.multi_reduction <add>, %10, %cst_10 [1] : vector<256x128xf32> to vector<256xf32>
      %12 = vector.shape_cast %11 : vector<256xf32> to vector<256x1xf32>
      %cst_11 = arith.constant 1.280000e+02 : f32
      %13 = vector.broadcast %cst_11 : f32 to vector<256x1xf32>
      %14 = arith.divf %12, %13 : vector<256x1xf32>
      %15 = arith.mulf %10, %10 : vector<256x128xf32>
      %cst_12 = arith.constant dense<0.000000e+00> : vector<256xf32>
      %16 = vector.multi_reduction <add>, %15, %cst_12 [1] : vector<256x128xf32> to vector<256xf32>
      %17 = vector.shape_cast %16 : vector<256xf32> to vector<256x1xf32>
      %cst_13 = arith.constant 1.280000e+02 : f32
      %18 = vector.broadcast %cst_13 : f32 to vector<256x1xf32>
      %19 = arith.divf %17, %18 : vector<256x1xf32>
      %20 = arith.mulf %14, %14 : vector<256x1xf32>
      %21 = arith.subf %19, %20 : vector<256x1xf32>
      %cst_14 = arith.constant 0.000000e+00 : f32
      %22 = vector.broadcast %cst_14 : f32 to vector<256x1xf32>
      %23 = arith.maximumf %21, %22 : vector<256x1xf32>
      %cst_15 = arith.constant 9.99999974E-6 : f32
      %24 = vector.broadcast %cst_15 : f32 to vector<256x1xf32>
      %25 = arith.addf %23, %24 : vector<256x1xf32>
      %26 = math.rsqrt %25 : vector<256x1xf32>
      %27 = vector.broadcast %14 : vector<256x1xf32> to vector<256x128xf32>
      %28 = arith.subf %10, %27 : vector<256x128xf32>
      %29 = vector.broadcast %26 : vector<256x1xf32> to vector<256x128xf32>
      %30 = arith.mulf %28, %29 : vector<256x128xf32>
      %c0_16 = arith.constant 0 : index
      %c0_17 = arith.constant 0 : index
      %31 = vector.load %arg3[%c0_16, %c0_17] : memref<1x128xf32, #tpu.memory_space<vmem>>, vector<1x128xf32>
      %32 = vector.broadcast %31 : vector<1x128xf32> to vector<256x128xf32>
      %33 = arith.mulf %30, %32 : vector<256x128xf32>
      %c0_18 = arith.constant 0 : index
      %c0_19 = arith.constant 0 : index
      %34 = vector.load %arg4[%c0_18, %c0_19] : memref<1x128xf32, #tpu.memory_space<vmem>>, vector<1x128xf32>
      %35 = vector.broadcast %34 : vector<1x128xf32> to vector<256x128xf32>
      %36 = arith.addf %33, %35 : vector<256x128xf32>
      %c0_20 = arith.constant 0 : index
      %c0_21 = arith.constant 0 : index
      %37 = vector.load %arg8[%c0_20, %c0_21] : memref<256x128xf32, #tpu.memory_space<vmem>>, vector<256x128xf32>
      tpu.vector_store %arg8[%c0_20, %c0_21], %36 {strides = array<i32>} : memref<256x128xf32, #tpu.memory_space<vmem>>, vector<256x128xf32>,
    } else {
    }
    %c0 = arith.constant 0 : index
    %c0_1 = arith.constant 0 : index
    %3 = vector.load %arg8[%c0, %c0_1] : memref<256x128xf32, #tpu.memory_space<vmem>>, vector<256x128xf32>
    %c0_2 = arith.constant 0 : index
    %c0_3 = arith.constant 0 : index
    %4 = vector.load %arg5[%c0_2, %c0_3] : memref<128x256xf32, #tpu.memory_space<vmem>>, vector<128x256xf32>
    %cst = arith.constant dense<0.000000e+00> : vector<256x256xf32>
    %5 = tpu.matmul %3, %4, %cst {dimension_numbers = #tpu.dot_dimension_numbers<[1], [0], [0], [1], [0, 0, 1, 1], [], []>} : vector<256x128xf32>, vector<128x256xf32>, vector<256x256xf32> -> vector<256x256xf32>
    %c0_4 = arith.constant 0 : index
    %c0_5 = arith.constant 0 : index
    %6 = vector.load %arg6[%c0_4, %c0_5] : memref<1x256xf32, #tpu.memory_space<vmem>>, vector<1x256xf32>
    %7 = vector.broadcast %6 : vector<1x256xf32> to vector<256x256xf32>
    %8 = arith.addf %5, %7 : vector<256x256xf32>
    %c0_6 = arith.constant 0 : index
    %c0_7 = arith.constant 0 : index
    %9 = vector.load %arg7[%c0_6, %c0_7] : memref<256x256xf32, #tpu.memory_space<vmem>>, vector<256x256xf32>
    tpu.vector_store %arg7[%c0_6, %c0_7], %8 {strides = array<i32>} : memref<256x256xf32, #tpu.memory_space<vmem>>, vector<256x256xf32>,
    return
  }
  func.func @transform_0(%arg0: i32, %arg1: i32) -> (i32, i32) {
    %c0_i32 = arith.constant 0 : i32
    %c0_i32_0 = arith.constant 0 : i32
    return %arg0, %c0_i32 : i32, i32
  }
  func.func @transform_1(%arg0: i32, %arg1: i32) -> (i32, i32) {
    %c0_i32 = arith.constant 0 : i32
    %c0_i32_0 = arith.constant 0 : i32
    %c0_i32_1 = arith.constant 0 : i32
    return %c0_i32, %c0_i32_0 : i32, i32
  }
  func.func @transform_2(%arg0: i32, %arg1: i32) -> (i32, i32) {
    %c0_i32 = arith.constant 0 : i32
    %c0_i32_0 = arith.constant 0 : i32
    %c0_i32_1 = arith.constant 0 : i32
    return %c0_i32, %c0_i32_0 : i32, i32
  }
  func.func @transform_3(%arg0: i32, %arg1: i32) -> (i32, i32) {
    %c0_i32 = arith.constant 0 : i32
    %c0_i32_0 = arith.constant 0 : i32
    return %c0_i32, %arg1 : i32, i32
  }
  func.func @transform_4(%arg0: i32, %arg1: i32) -> (i32, i32) {
    %c0_i32 = arith.constant 0 : i32
    %c0_i32_0 = arith.constant 0 : i32
    return %c0_i32, %arg1 : i32, i32
  }
  func.func @transform_5(%arg0: i32, %arg1: i32) -> (i32, i32) {
    %c0_i32 = arith.constant 0 : i32
    return %arg0, %arg1 : i32, i32
  }
}

</mosaic_0001>

<bundles_post_ra>
// kernel: tpu_custom_call.1
= control target key start
LH: loop header
LB: loop body
LE: loop exit
PB: predicated region body
PF: predicated region fallthrough
CT: control target
= control target key end

     0   :  { %s3368_s0 = inlined_call_operand.hbm [shape: f32[512,128], index: 0, kind: input, shape index: {}]   ;;  %s3369_s1 = inlined_call_operand.hbm [shape: f32[1,128], index: 1, kind: input, shape index: {}]   ;;  %s3370_s2 = inlined_call_operand.vmem [shape: f32[1,128], index: 2, kind: input, shape index: {}]   ;;  %s3371_s3 = inlined_call_operand.hbm [shape: f32[128,256], index: 3, kind: input, shape index: {}]   ;;  %s3372_s4 = inlined_call_operand.vmem [shape: f32[1,256], index: 4, kind: input, shape index: {}]   ;;  %s3373_s5 = inlined_call_operand.hbm [shape: f32[512,256], index: 5, kind: output, shape index: {}]  }
   0x1   :  { %3376 = sst [smem:[#allocation14_spill]] %s3369_s1 }
   0x2   :  { %3377 = sst [smem:[#allocation15_spill]] %s3371_s3 }
   0x3   :  { %10 = vsyncpa [#allocation4], 0 }
   0x4   :  { %12 = vsyncpa [#allocation4 + $0x1], 0 }
   0x5   :  { %13 = vsyncpa [#allocation7], 0 }
   0x6   :  { %14 = vsyncpa [#allocation5], 0 }
   0x7   :  { %16 = vsyncpa [#allocation5 + $0x1], 0  ;;  %s2155_s18 = smov 0   ;;  %s2157_s19 = smov 0  }
   0x8   :  { %s2159_s20 = smov 0   ;;  %s2161_s21 = smov 0  }
   0x9   :  { %s2163_s22 = smov 0   ;;  %s2165_s23 = smov 0  }
   0xa LB: > { %3378 = sst [smem:[#allocation13_spill]] %s2114_s23  ;;  %s1700_s24 = sadd.s32 4294967295, %s2114_s23   ;;  %s2114_s23 = sphi %s2165_s23, %s22_s23   ;;  %s2110_s22 = sphi %s2163_s22, %s3420_s22   ;;  %s2106_s21 = sphi %s2161_s21, %s3419_s21   ;;  %s2102_s20 = sphi %s2159_s20, %s3418_s20   ;;  %s2098_s19 = sphi %s2157_s19, %s3417_s19   ;;  %s2094_s18 = sphi %s2155_s18, %s3416_s18  }
   0xb   : > { %s1701_s25 = sadd.s32 4294967294, %s2114_s23   ;;  %p48_p0 = scmp.ne.s32.totalorder %s2102_s20, %s2098_s19 }
   0xc   : > { %p49_p1 = scmp.eq.s32.totalorder %s2114_s23, 0  ;;  %p54_p2 = scmp.ne.s32.totalorder %s2098_s19, %s2094_s18 }
   0xd   : > { %p2193_p3 = scmp.eq.s32.totalorder %s1700_s24, 0  ;;  %p174_p4 = scmp.eq.s32.totalorder %s1700_s24, 1 }
   0xe   : > { %p2197_p5 = por %p49_p1, %p48_p0  ;;  %p180_p6 = scmp.eq.s32.totalorder %s1701_s25, 1 }
   0xf   : > { %p2203_p7 = por %p2193_p3, %p54_p2  ;;  %p2207_p8 = por %p174_p4, %p48_p0 }
  0x10   : > { %p2211_p9 = por %p180_p6, %p54_p2  ;;  %p1702_p10 = scmp.ge.s32.totalorder %s2114_s23, 1 }
  0x11   : > { %p187_p11 = scmp.lt.s32.totalorder %s2114_s23, 3  ;;  %s3384_s1 = sld [smem:[#allocation14_spill]] }
  0x12   : > { %s2116_s11 = smov [#allocation6]   ;;  %p1706_p13 = scmp.ge.s32.totalorder %s2114_s23, 2 }
  0x13   : > { %p2220_p12 = pnand %p1702_p10, %p187_p11  ;;  %s201_s12 = sshll.u32 %s2116_s11, 4  ;;  %s202_s12 = int_to_ptr.vmem [resolvable:$true] %s201_s12 }
  0x14   : > { %p1785_p1 = scmp.lt.s32.totalorder %s2114_s23, 2  ;;  %s3386_s3 = sld [smem:[#allocation15_spill]] }
  0x15   : > { %p1768_p0 = pneg %p2220_p12  ;;  %s2117_s17 = smov [#allocation8]  }
  0x16   : > { %p2235_p4 = pnand %p1785_p1, %p2197_p5  ;;  %s218_s24 = sshll.u32 %s2117_s17, 4  ;;  %s219_s24 = int_to_ptr.vmem [resolvable:$true] %s218_s24 }
  0x17   : > { %s199_s9 = sshll.u32 %s3384_s1, 4  ;;  %p1769_p2 = pnand %p1768_p0, %p2193_p3  ;;  %s200_s9 = int_to_ptr.hbm [resolvable:$true] %s199_s9 }
  0x18   : > { %s2118_s25 = smov 256   ;;  %s2119_s7 = smov 16  }
  0x19   : > { %1771 = dma.hbm_to_vmem [thread:$0]  (!%p1769_p2), %s200_s9, 16, %s202_s12, [#allocation7]  }
  0x1a   : > { %s216_s15 = sshll.u32 %s3386_s3, 4  ;;  %s240_s8 = sand.u32 1, %s2102_s20   ;;  %s217_s15 = int_to_ptr.hbm [resolvable:$true] %s216_s15 }
  0x1b   : > { %1774 = dma.hbm_to_vmem [thread:$0]  (!%p1769_p2), %s217_s15, 4096, %s219_s24, [#allocation7], %s2118_s25, %s2118_s25, %s2119_s7  }
  0x1c   : > { %s34_s11 = sadd.s32 1, %s2110_s22  ;;  %s1707_s13 = sshll.u32 %s240_s8, 8 }
  0x1d   : > { %p36_p6 = scmp.ge.s32.totalorder %s34_s11, 2  ;;  %s1721_s28 = sshll.u32 %s2110_s22, 8 }
  0x1e   : > { %s244_s14 = scalar_lea.vmem [#allocation3], %s1707_s13  ;;  %s249_s9 = scalar_lea.hbm %s3368_s0, %s1721_s28 }
  0x1f   : > { %s252_s26 = sshll.u32 %s244_s14, 4  ;;  %s3422_s11 = smov (%p36_p6, %s34_s11), 0  ;;  %s253_s26 = int_to_ptr.vmem [resolvable:$true] %s252_s26 }
  0x20   : > { %s38_s12 = ssub.s32 %s2110_s22, %s3422_s11  ;;  %s250_s3 = sshll.u32 %s249_s9, 4  ;;  %s251_s3 = int_to_ptr.hbm [resolvable:$true] %s250_s3 }
  0x21   : > { %p39_p5 = scmp.eq.s32.totalorder %s38_s12, 0  ;;  %s3388_s15 = sadd.s32 1, %s2102_s20 }
  0x22   : > { %s241_s25 = scalar_lea.sflag [#allocation4], %s240_s8  ;;  %s2120_s7 = smov 128  }
  0x23   : > { %s2252_s24 = scalar_select %p39_p5, %s2102_s20, %s3388_s15  }
  0x24   : > { %s2121_s23 = smov 8   ;;  %264 = sbr.rel (%p2220_p12) target bundleno = 495 (0x1ef), region = 40 }
  0x25   : > { %1778 = dma.hbm_to_vmem [thread:$0]  (!%p2235_p4), %s251_s3, 4096, %s253_s26, %s241_s25, %s2120_s7, %s2120_s7, %s2121_s23  }
  0x26   : > { %s2259_s1 = sand.u32 (!%p2220_p12), 1, %s2098_s19  }
  0x27   : > { %s1711_s13 = sshll.u32 (!%p2220_p12), %s2259_s1, 8  ;;  %s267_s28 = scalar_lea.sflag (!%p2220_p12), [#allocation4], %s2259_s1 }
  0x28   : > { %s2263_s14 = scalar_lea.vmem (!%p2220_p12), [#allocation3], %s1711_s13 }
  0x29   : > { %2081 = dma.done.wait (%p2203_p7), %s267_s28, 4096  }
  0x2a   : > { %2083 = vsyncadd (%p2203_p7), %s267_s28, 4294963200 }
  0x2b   : > { %2085 = dma.done.wait (%p2193_p3), [#allocation7], 4112  }
  0x2c   : > { %2087 = vsyncadd (%p2193_p3), [#allocation7], 4294963184  ;;  %v2274_v0 = vld [vmem:[%s2263_s14 + $0x80] sm:$0xff]  ;;  %v2284_v3 = vld [vmem:[%s2263_s14 + $0x88] sm:$0xff]  ;;  %v2122_v38 = vmov 128.0   ;;  %s1714_s16 = sshll.u32 %s2259_s1, 9 }
  0x2d   : > { %v2277_v1 = vld [vmem:[%s2263_s14] sm:$0xff]  ;;  %389 = vadd.xlane.f32.xlu0 %v2274_v0  ;;  %v476_v4 = vmul.f32 %v2274_v0, %v2274_v0  ;;  %v477_v5 = vmul.f32 %v2284_v3, %v2284_v3  ;;  %v2292_v6 = vld [vmem:[%s2263_s14 + $0x8] sm:$0xff]  ;;  %v2295_v7 = vld [vmem:[%s2263_s14 + $0x90] sm:$0xff]  ;;  %1848 = vrcp.f32 %v2122_v38  ;;  %s3124_s8 = scalar_lea.vmem [#allocation9], %s1714_s16  ;;  %s1723_s17 = sshll.u32 %s2106_s21, 9 }
  0x2e   : > { %357 = vadd.xlane.f32.xlu1 %v2277_v1  ;;  %v460_v2 = vmul.f32 %v2277_v1, %v2277_v1  ;;  %v461_v8 = vmul.f32 %v2292_v6, %v2292_v6  ;;  %v478_v9 = vmul.f32 %v2295_v7, %v2295_v7  ;;  %v2304_v10 = vld [vmem:[%s2263_s14 + $0x10] sm:$0xff]  ;;  %v2307_v11 = vld [vmem:[%s2263_s14 + $0x98] sm:$0xff]  ;;  %v2320_v15 = vld [vmem:[%s2263_s14 + $0xa0] sm:$0xff]  ;;  %s1579_s15 = scalar_lea.hbm %s3373_s5, %s1723_s17  ;;  %s1580_s25 = sshll.u32 %s3124_s8, 4  ;;  %s1581_s25 = int_to_ptr.vmem [resolvable:$true] %s1580_s25 }
  0x2f   : > { %v462_v12 = vmul.f32 %v2304_v10, %v2304_v10  ;;  %v479_v13 = vmul.f32 %v2307_v11, %v2307_v11  ;;  %v2316_v14 = vld [vmem:[%s2263_s14 + $0x18] sm:$0xff]  ;;  %v480_v17 = vmul.f32 %v2320_v15, %v2320_v15  ;;  %v2328_v18 = vld [vmem:[%s2263_s14 + $0x20] sm:$0xff]  ;;  %v346_v19 = vld [vmem:[%s2263_s14 + $0xa8] sm:$0xff]  ;;  %s1582_s7 = sshll.u32 %s1579_s15, 4  ;;  %s1565_s21 = scalar_lea.sflag [#allocation5], %s2259_s1  ;;  %s1583_s7 = int_to_ptr.hbm [resolvable:$true] %s1582_s7 }
  0x30   : > { %492 = vadd.xlane.f32.xlu2 %v460_v2  ;;  %v463_v16 = vmul.f32 %v2316_v14, %v2316_v14  ;;  %v464_v20 = vmul.f32 %v2328_v18, %v2328_v18  ;;  %v481_v21 = vmul.f32 %v346_v19, %v346_v19  ;;  %v330_v22 = vld [vmem:[%s2263_s14 + $0x28] sm:$0xff]  ;;  %v347_v23 = vld [vmem:[%s2263_s14 + $0xb0] sm:$0xff]  ;;  %v348_v27 = vld [vmem:[%s2263_s14 + $0xb8] sm:$0xff]  ;;  %s2042_s13 = sshra.s32 %s1583_s7, 4  ;;  %s2048_s23 = scalar_lea.hbm %s3373_s5, 1024  ;;  %s2043_s13 = int_to_ptr.hbm [resolvable:$true] %s2042_s13 }
  0x31   : > { %v465_v24 = vmul.f32 %v330_v22, %v330_v22  ;;  %v482_v25 = vmul.f32 %v347_v23, %v347_v23  ;;  %v331_v26 = vld [vmem:[%s2263_s14 + $0x30] sm:$0xff]  ;;  %v483_v29 = vmul.f32 %v348_v27, %v348_v27  ;;  %v332_v30 = vld [vmem:[%s2263_s14 + $0x38] sm:$0xff]  ;;  %v349_v31 = vld [vmem:[%s2263_s14 + $0xc0] sm:$0xff]  ;;  %s2044_s28 = scalar_lea.hbm %s2043_s13, 512  ;;  %p2049_p11 = scmp.lt.s32.totalorder %s2043_s13, %s3373_s5 }
  0x32   : > { %v466_v28 = vmul.f32 %v331_v26, %v331_v26  ;;  %v467_v32 = vmul.f32 %v332_v30, %v332_v30  ;;  %v484_v33 = vmul.f32 %v349_v31, %v349_v31  ;;  %v333_v34 = vld [vmem:[%s2263_s14 + $0x40] sm:$0xff]  ;;  %v350_v35 = vld [vmem:[%s2263_s14 + $0xc8] sm:$0xff]  ;;  %v1266_v36 = vld [vmem:[#allocation8 + $0xf0] sm:$0xff]  ;;  %p2045_p3 = scmp.ne.s32.totalorder %s2043_s13, %s2044_s28  ;;  %p2050_p12 = scmp.lt.s32.totalorder %s2048_s23, %s2044_s28 }
  0x33   : > { %v1267_v37 = vld [vmem:[#allocation8 + $0xf8] sm:$0xff]  ;;  %1274 = vmatpush.msra.mxu0 %v1266_v36  ;;  %v1264_v39 = vld [vmem:[#allocation8 + $0xe0] sm:$0xff]  ;;  %v1265_v40 = vld [vmem:[#allocation8 + $0xe8] sm:$0xff]  ;;  %1724 = vmatpush.msra.mxu2 %v1266_v36  ;;  %v468_v43 = vmul.f32 %v333_v34, %v333_v34  ;;  %v485_v44 = vmul.f32 %v350_v35, %v350_v35  ;;  %v2342_v47 = vpop.eup %1848 }
  0x34   : > { %1387 = vmatpush.msra.mxu1 %v1267_v37  ;;  %v1262_v41 = vld [vmem:[#allocation8 + $0xd0] sm:$0xff]  ;;  %v1263_v42 = vld [vmem:[#allocation8 + $0xd8] sm:$0xff]  ;;  %1740 = vmatpush.msra.mxu3 %v1267_v37  ;;  %v1260_v45 = vld [vmem:[#allocation8 + $0xc0] sm:$0xff]  ;;  %v422_v51 = vmul.f32 128.0, %v2342_v47  ;;  %vm426_vm0 = vweird.f32 %v2342_v47  ;;  %p2046_p7 = pnand %p2045_p3, %p2207_p8  ;;  %p2051_p0 = por %p2050_p12, %p2049_p11 }
  0x35   : > { %524 = vadd.xlane.f32.xlu0 %v476_v4  ;;  %1275 = vmatpush.msra.mxu0 %v1264_v39  ;;  %v1261_v46 = vld [vmem:[#allocation8 + $0xc8] sm:$0xff]  ;;  %v1258_v49 = vld [vmem:[#allocation8 + $0xb0] sm:$0xff]  ;;  %v1259_v50 = vld [vmem:[#allocation8 + $0xb8] sm:$0xff] }
  0x36   : > { %391 = vadd.xlane.f32.xlu1 %v2284_v3  ;;  %1388 = vmatpush.msra.mxu1 %v1265_v40  ;;  %v334_v48 = vld [vmem:[%s2263_s14 + $0x48] sm:$0xff]  ;;  %v351_v54 = vld [vmem:[%s2263_s14 + $0xd0] sm:$0xff]  ;;  %v1255_v56 = vld [vmem:[#allocation8 + $0x98] sm:$0xff]  ;;  %v423_v58 = vsub.f32 1.0, %v422_v51  ;;  %p2047_p10 = pneg %p2046_p7 }
  0x37   : > { %1725 = vmatpush.msra.mxu2 %v1264_v39  ;;  %1276 = vmatpush.msra.mxu0 %v1262_v41  ;;  %v1256_v52 = vld [vmem:[#allocation8 + $0xa0] sm:$0xff]  ;;  %v1257_v53 = vld [vmem:[#allocation8 + $0xa8] sm:$0xff]  ;;  %v1254_v55 = vld [vmem:[#allocation8 + $0x90] sm:$0xff]  ;;  %v469_v57 = vmul.f32 %v334_v48, %v334_v48  ;;  %v486_v61 = vmul.f32 %v351_v54, %v351_v54 }
  0x38   : > { %526 = vadd.xlane.f32.xlu2 %v477_v5  ;;  %1389 = vmatpush.msra.mxu1 %v1263_v42  ;;  %v1252_v59 = vld [vmem:[#allocation8 + $0x80] sm:$0xff]  ;;  %v1253_v60 = vld [vmem:[#allocation8 + $0x88] sm:$0xff]  ;;  %v1250_v62 = vld [vmem:[#allocation8 + $0x70] sm:$0xff]  ;;  %v424_v2 = vmul.f32 %v2342_v47, %v423_v58  ;;  %p2052_p1 = pnand %p2051_p0, %p2047_p10 }
  0x39   : > { %1741 = vmatpush.msra.mxu3 %v1265_v40  ;;  %1726 = vmatpush.msra.mxu2 %v1262_v41  ;;  %v1251_v63 = vld [vmem:[#allocation8 + $0x78] sm:$0xff]  ;;  %v1248_v4 = vld [vmem:[#allocation8 + $0x60] sm:$0xff]  ;;  %v1249_v5 = vld [vmem:[#allocation8 + $0x68] sm:$0xff] }
  0x3a   : > { %1277 = vmatpush.msra.mxu0 %v1260_v45  ;;  %1390 = vmatpush.msra.mxu1 %v1261_v46  ;;  %v1239_v36 = vld [vmem:[#allocation8 + $0x18] sm:$0xff]  ;;  %v1236_v38 = vld [vmem:[#allocation8] sm:$0xff]  ;;  %v1237_v40 = vld [vmem:[#allocation8 + $0x8] sm:$0xff] }
  0x3b   : > { %1742 = vmatpush.msra.mxu3 %v1263_v42  ;;  %1727 = vmatpush.msra.mxu2 %v1260_v45 }
  0x3c   : > { %1278 = vmatpush.msra.mxu0 %v1258_v49  ;;  %1391 = vmatpush.msra.mxu1 %v1259_v50 }
  0x3d   : > { %359 = vadd.xlane.f32.xlu0 %v2292_v6  ;;  %1743 = vmatpush.msra.mxu3 %v1261_v46 }
  0x3e   : > { %393 = vadd.xlane.f32.xlu1 %v2295_v7  ;;  %1279 = vmatpush.msra.mxu0 %v1256_v52 }
  0x3f   : > { %1392 = vmatpush.msra.mxu1 %v1257_v53  ;;  %1728 = vmatpush.msra.mxu2 %v1258_v49 }
  0x40   : > { %494 = vadd.xlane.f32.xlu2 %v461_v8  ;;  %1280 = vmatpush.msra.mxu0 %v1254_v55  ;;  %v335_v8 = vld [vmem:[%s2263_s14 + $0x50] sm:$0xff] }
  0x41   : > { %1393 = vmatpush.msra.mxu1 %v1255_v56  ;;  %1744 = vmatpush.msra.mxu3 %v1259_v50 }
  0x42   : > { %1281 = vmatpush.msra.mxu0 %v1252_v59  ;;  %1729 = vmatpush.msra.mxu2 %v1256_v52 }
  0x43   : > { %1394 = vmatpush.msra.mxu1 %v1253_v60  ;;  %1745 = vmatpush.msra.mxu3 %v1257_v53 }
  0x44   : > { %1282 = vmatpush.msra.mxu0 %v1250_v62  ;;  %1730 = vmatpush.msra.mxu2 %v1254_v55 }
  0x45   : > { %528 = vadd.xlane.f32.xlu0 %v478_v9  ;;  %1395 = vmatpush.msra.mxu1 %v1251_v63  ;;  %v1246_v9 = vld [vmem:[#allocation8 + $0x50] sm:$0xff] }
  0x46   : > { %361 = vadd.xlane.f32.xlu1 %v2304_v10  ;;  %1283 = vmatpush.msra.mxu0 %v1248_v4 }
  0x47   : > { %1746 = vmatpush.msra.mxu3 %v1255_v56  ;;  %1396 = vmatpush.msra.mxu1 %v1249_v5 }
  0x48   : > { %395 = vadd.xlane.f32.xlu2 %v2307_v11  ;;  %1731 = vmatpush.msra.mxu2 %v1252_v59 }
  0x49   : > { %1284 = vmatpush.msra.mxu0 %v1246_v9  ;;  %1747 = vmatpush.msra.mxu3 %v1253_v60 }
  0x4a   : > { %1732 = vmatpush.msra.mxu2 %v1250_v62 }
  0x4b   : > { %1748 = vmatpush.msra.mxu3 %v1251_v63 }
  0x4c   : > { %1733 = vmatpush.msra.mxu2 %v1248_v4 }
  0x4d   : > { %496 = vadd.xlane.f32.xlu0 %v462_v12  ;;  %v1247_v12 = vld [vmem:[#allocation8 + $0x58] sm:$0xff]  ;;  %1749 = vmatpush.msra.mxu3 %v1249_v5 }
  0x4e   : > { %530 = vadd.xlane.f32.xlu1 %v479_v13  ;;  %v352_v13 = vld [vmem:[%s2263_s14 + $0xd8] sm:$0xff]  ;;  %1397 = vmatpush.msra.mxu1 %v1247_v12 }
  0x4f   : > { %1734 = vmatpush.msra.mxu2 %v1246_v9  ;;  %1750 = vmatpush.msra.mxu3 %v1247_v12 }
  0x50   : > { %363 = vadd.xlane.f32.xlu2 %v2316_v14 }
  0x55   : > { %397 = vadd.xlane.f32.xlu0 %v2320_v15 }
  0x56   : > { %498 = vadd.xlane.f32.xlu1 %v463_v16  ;;  %v425_v16 = vadd.f32 %v2342_v47, %v424_v2 }
  0x58   : > { %532 = vadd.xlane.f32.xlu2 %v480_v17  ;;  %v470_v17 = vmul.f32 %v335_v8, %v335_v8 }
  0x5d   : > { %365 = vadd.xlane.f32.xlu0 %v2328_v18 }
  0x5e   : > { %399 = vadd.xlane.f32.xlu1 %v346_v19  ;;  %v1244_v19 = vld [vmem:[#allocation8 + $0x40] sm:$0xff] }
  0x5f   : > { %1285 = vmatpush.msra.mxu0 %v1244_v19  ;;  %1735 = vmatpush.msra.mxu2 %v1244_v19 }
  0x60   : > { %500 = vadd.xlane.f32.xlu2 %v464_v20  ;;  %v1245_v20 = vld [vmem:[#allocation8 + $0x48] sm:$0xff] }
  0x61   : > { %1398 = vmatpush.msra.mxu1 %v1245_v20  ;;  %1751 = vmatpush.msra.mxu3 %v1245_v20 }
  0x65   : > { %534 = vadd.xlane.f32.xlu0 %v481_v21  ;;  %v1242_v21 = vld [vmem:[#allocation8 + $0x30] sm:$0xff] }
  0x66   : > { %367 = vadd.xlane.f32.xlu1 %v330_v22  ;;  %v2353_v22 = vsel %vm426_vm0, %v2342_v47, %v425_v16  ;;  %1286 = vmatpush.msra.mxu0 %v1242_v21 }
  0x67   : > { %1736 = vmatpush.msra.mxu2 %v1242_v21 }
  0x68   : > { %401 = vadd.xlane.f32.xlu2 %v347_v23  ;;  %v1243_v23 = vld [vmem:[#allocation8 + $0x38] sm:$0xff] }
  0x69   : > { %1399 = vmatpush.msra.mxu1 %v1243_v23  ;;  %1752 = vmatpush.msra.mxu3 %v1243_v23 }
  0x6d   : > { %502 = vadd.xlane.f32.xlu0 %v465_v24  ;;  %v1240_v24 = vld [vmem:[#allocation8 + $0x20] sm:$0xff] }
  0x6e   : > { %536 = vadd.xlane.f32.xlu1 %v482_v25  ;;  %1287 = vmatpush.msra.mxu0 %v1240_v24 }
  0x6f   : > { %1737 = vmatpush.msra.mxu2 %v1240_v24 }
  0x70   : > { %369 = vadd.xlane.f32.xlu2 %v331_v26 }
  0x75   : > { %403 = vadd.xlane.f32.xlu0 %v348_v27 }
  0x76   : > { %504 = vadd.xlane.f32.xlu1 %v466_v28  ;;  %v487_v28 = vmul.f32 %v352_v13, %v352_v13 }
  0x78   : > { %538 = vadd.xlane.f32.xlu2 %v483_v29  ;;  %v1241_v29 = vld [vmem:[#allocation8 + $0x28] sm:$0xff] }
  0x79   : > { %1400 = vmatpush.msra.mxu1 %v1241_v29  ;;  %1753 = vmatpush.msra.mxu3 %v1241_v29 }
  0x7b   : > { %1401 = vmatpush.msra.mxu1 %v1239_v36  ;;  %1754 = vmatpush.msra.mxu3 %v1239_v36 }
  0x7d   : > { %371 = vadd.xlane.f32.xlu0 %v332_v30  ;;  %1402 = vmatpush.msra.mxu1 %v1237_v40 }
  0x7e   : > { %405 = vadd.xlane.f32.xlu1 %v349_v31  ;;  %v336_v31 = vld [vmem:[%s2263_s14 + $0x58] sm:$0xff]  ;;  %1755 = vmatpush.msra.mxu3 %v1237_v40 }
  0x80   : > { %506 = vadd.xlane.f32.xlu2 %v467_v32 }
  0x85   : > { %540 = vadd.xlane.f32.xlu0 %v484_v33  ;;  %v1238_v33 = vld [vmem:[#allocation8 + $0x10] sm:$0xff] }
  0x86   : > { %373 = vadd.xlane.f32.xlu1 %v333_v34  ;;  %1288 = vmatpush.msra.mxu0 %v1238_v33 }
  0x87   : > { %1738 = vmatpush.msra.mxu2 %v1238_v33 }
  0x88   : > { %407 = vadd.xlane.f32.xlu2 %v350_v35  ;;  %v353_v35 = vld [vmem:[%s2263_s14 + $0xe0] sm:$0xff]  ;;  %1289 = vmatpush.msra.mxu0 %v1236_v38 }
  0x89   : > { %v488_v45 = vmul.f32 %v353_v35, %v353_v35  ;;  %1739 = vmatpush.msra.mxu2 %v1236_v38  ;;  %v355_v38 = vld [vmem:[%s2263_s14 + $0xf0] sm:$0xff] }
  0x8d   : > { %508 = vadd.xlane.f32.xlu0 %v468_v43 }
  0x8e   : > { %542 = vadd.xlane.f32.xlu1 %v485_v44  ;;  %v471_v44 = vmul.f32 %v336_v31, %v336_v31 }
  0x90   : > { %375 = vadd.xlane.f32.xlu2 %v334_v48 }
  0x95   : > { %409 = vadd.xlane.f32.xlu0 %v351_v54  ;;  %v337_v54 = vld [vmem:[%s2263_s14 + $0x60] sm:$0xff] }
  0x96   : > { %510 = vadd.xlane.f32.xlu1 %v469_v57  ;;  %v472_v2 = vmul.f32 %v337_v54, %v337_v54 }
  0x98   : > { %544 = vadd.xlane.f32.xlu2 %v486_v61  ;;  %v354_v61 = vld [vmem:[%s2263_s14 + $0xe8] sm:$0xff] }
  0x99   : > { %v489_v12 = vmul.f32 %v354_v61, %v354_v61 }
  0x9d   : > { %377 = vadd.xlane.f32.xlu0 %v335_v8 }
  0x9e   : > { %411 = vadd.xlane.f32.xlu1 %v352_v13 }
  0xa0   : > { %512 = vadd.xlane.f32.xlu2 %v470_v17  ;;  %v390_v25 = vpop.xlane.xlu0 %389 }
  0xa1   : > { %v358_v26 = vpop.xlane.xlu1 %357  ;;  %v2364_v37 = vmul.f32 %v2353_v22, %v390_v25 }
  0xa2   : > { %v2356_v27 = vmul.f32 %v2353_v22, %v358_v26 }
  0xa3   : > { %v493_v30 = vpop.xlane.xlu2 %492  ;;  %v604_v46 = vmul.f32 %v2364_v37, %v2364_v37 }
  0xa4   : > { %v588_v32 = vmul.f32 %v2356_v27, %v2356_v27  ;;  %v556_v34 = vmul.f32 %v493_v30, %v2353_v22 }
  0xa5   : > { %546 = vadd.xlane.f32.xlu0 %v487_v28  ;;  %v338_v28 = vld [vmem:[%s2263_s14 + $0x68] sm:$0xff] }
  0xa6   : > { %379 = vadd.xlane.f32.xlu1 %v336_v31  ;;  %v620_v39 = vsub.f32 %v556_v34, %v588_v32 }
  0xa8   : > { %413 = vadd.xlane.f32.xlu2 %v353_v35  ;;  %v652_v41 = vmax.f32 %v620_v39, 0.0  ;;  %v525_v42 = vpop.xlane.xlu0 %524 }
  0xa9   : > { %v392_v43 = vpop.xlane.xlu1 %391  ;;  %v572_v47 = vmul.f32 %v525_v42, %v2353_v22  ;;  %v1036_v42 = vsub.f32 %v2277_v1, %v2356_v27  ;;  %v490_v1 = vmul.f32 %v355_v38, %v355_v38 }
  0xaa   : > { %v2370_v48 = vmul.f32 %v2353_v22, %v392_v43  ;;  %v2372_v49 = vadd.f32 1e-05, %v652_v41  ;;  %v473_v41 = vmul.f32 %v338_v28, %v338_v28 }
  0xab   : > { %v527_v50 = vpop.xlane.xlu2 %526  ;;  %v636_v51 = vsub.f32 %v572_v47, %v604_v46 }
  0xac   : > { %v605_v52 = vmul.f32 %v2370_v48, %v2370_v48  ;;  %v573_v53 = vmul.f32 %v527_v50, %v2353_v22  ;;  %1850 = vrsqrt.f32 %v2372_v49  ;;  %vm722_vm2 = vweird.f32 %v2372_v49 }
  0xad   : > { %v668_v55 = vmax.f32 %v636_v51, 0.0  ;;  %514 = vadd.xlane.f32.xlu0 %v471_v44 }
  0xae   : > { %v637_v56 = vsub.f32 %v573_v53, %v605_v52  ;;  %548 = vadd.xlane.f32.xlu1 %v488_v45  ;;  %v2423_v52 = vld [vmem:[#allocation6] ss:$0 sm:$0xff] }
  0xaf   : > { %v2379_v57 = vadd.f32 1e-05, %v668_v55 }
  0xb0   : > { %v669_v58 = vmax.f32 %v637_v56, 0.0  ;;  %381 = vadd.xlane.f32.xlu2 %v337_v54  ;;  %v360_v59 = vpop.xlane.xlu0 %359 }
  0xb1   : > { %v394_v60 = vpop.xlane.xlu1 %393  ;;  %1852 = vrsqrt.f32 %v2379_v57  ;;  %v2386_v63 = vmul.f32 %v2353_v22, %v360_v59  ;;  %vm882_vm5 = vweird.f32 %v2379_v57  ;;  %v2434_v59 = vld [vmem:[%s3370_s2] ss:$0 sm:$0xff] }
  0xb2   : > { %v2383_v62 = vadd.f32 1e-05, %v669_v58  ;;  %v1851_v4 = vpop.eup %1850  ;;  %v2394_v17 = vmul.f32 %v2353_v22, %v394_v60 }
  0xb3   : > { %v495_v5 = vpop.xlane.xlu2 %494  ;;  %v717_v8 = vmul.f32 %v1851_v4, %v2372_v49  ;;  %v589_v9 = vmul.f32 %v2386_v63, %v2386_v63  ;;  %vm723_vm1 = vweird.f32 %v1851_v4 }
  0xb4   : > { %1854 = vrsqrt.f32 %v2383_v62  ;;  %v557_v13 = vmul.f32 %v495_v5, %v2353_v22  ;;  %v606_v31 = vmul.f32 %v2394_v17, %v2394_v17  ;;  %vm724_vm3 = vmor %vm722_vm2, %vm723_vm1  ;;  %vm892_vm8 = vweird.f32 %v2383_v62 }
  0xb5   : > { %v718_v16 = vmul.f32 %v1851_v4, %v717_v8  ;;  %415 = vadd.xlane.f32.xlu0 %v354_v61  ;;  %v1052_v8 = vsub.f32 %v2274_v0, %v2364_v37 }
  0xb6   : > { %516 = vadd.xlane.f32.xlu1 %v472_v2  ;;  %v621_v19 = vsub.f32 %v557_v13, %v589_v9  ;;  %v339_v13 = vld [vmem:[%s2263_s14 + $0x70] sm:$0xff] }
  0xb7   : > { %v2396_v20 = vpop.eup %1852  ;;  %v719_v21 = vmul.f32 0.5, %v718_v16 }
  0xb8   : > { %550 = vadd.xlane.f32.xlu2 %v489_v12  ;;  %v877_v23 = vmul.f32 %v2396_v20, %v2379_v57  ;;  %v653_v24 = vmax.f32 %v621_v19, 0.0  ;;  %v529_v25 = vpop.xlane.xlu0 %528  ;;  %vm883_vm4 = vweird.f32 %v2396_v20 }
  0xb9   : > { %v362_v26 = vpop.xlane.xlu1 %361  ;;  %v720_v30 = vsub.f32 1.5, %v719_v21  ;;  %v574_v32 = vmul.f32 %v529_v25, %v2353_v22  ;;  %vm884_vm7 = vmor %vm882_vm5, %vm883_vm4  ;;  %v356_v25 = vld [vmem:[%s2263_s14 + $0xf8] sm:$0xff] }
  0xba   : > { %v2401_v29 = vpop.eup %1854  ;;  %v878_v33 = vmul.f32 %v2396_v20, %v877_v23  ;;  %v2409_v35 = vadd.f32 1e-05, %v653_v24  ;;  %v2421_v46 = vmul.f32 %v2353_v22, %v362_v26 }
  0xbb   : > { %v887_v34 = vmul.f32 %v2401_v29, %v2383_v62  ;;  %v396_v36 = vpop.xlane.xlu2 %395  ;;  %v638_v39 = vsub.f32 %v574_v32, %v606_v31  ;;  %v721_v47 = vmul.f32 %v1851_v4, %v720_v30  ;;  %vm893_vm6 = vweird.f32 %v2401_v29 }
  0xbc   : > { %v2413_v40 = vmul.f32 %v2353_v22, %v396_v36  ;;  %v879_v43 = vmul.f32 0.5, %v878_v33  ;;  %1856 = vrsqrt.f32 %v2409_v35  ;;  %v590_v61 = vmul.f32 %v2421_v46, %v2421_v46  ;;  %vm2465_vm9 = vmor %vm892_vm8, %vm893_vm6 }
  0xbd   : > { %v888_v44 = vmul.f32 %v2401_v29, %v887_v34  ;;  %v670_v45 = vmax.f32 %v638_v39, 0.0  ;;  %383 = vadd.xlane.f32.xlu0 %v338_v28  ;;  %v725_v53 = vsel %vm724_vm3, %v1851_v4, %v721_v47  ;;  %v1053_v31 = vsub.f32 %v2284_v3, %v2370_v48 }
  0xbe   : > { %417 = vadd.xlane.f32.xlu1 %v355_v38  ;;  %v880_v50 = vsub.f32 1.5, %v879_v43  ;;  %v607_v49 = vmul.f32 %v2413_v40, %v2413_v40  ;;  %v1068_v58 = vmul.f32 %v1036_v42, %v725_v53  ;;  %v474_v39 = vmul.f32 %v339_v13, %v339_v13 }
  0xbf   : > { %v889_v51 = vmul.f32 0.5, %v888_v44  ;;  %v2427_v27 = vadd.f32 1e-05, %v670_v45  ;;  %v491_v45 = vmul.f32 %v356_v25, %v356_v25  ;;  %vm732_vm11 = vweird.f32 %v2409_v35 }
  0xc0   : > { %518 = vadd.xlane.f32.xlu2 %v473_v41  ;;  %v497_v55 = vpop.xlane.xlu0 %496  ;;  %v881_v60 = vmul.f32 %v2396_v20, %v880_v50  ;;  %v1104_v12 = vmul.f32 %v2423_v52, %v1068_v58 }
  0xc1   : > { %v890_v54 = vsub.f32 1.5, %v889_v51  ;;  %v531_v56 = vpop.xlane.xlu1 %530  ;;  %1858 = vrsqrt.f32 %v2427_v27  ;;  %v558_v2 = vmul.f32 %v497_v55, %v2353_v22  ;;  %vm902_vm14 = vweird.f32 %v2427_v27 }
  0xc2   : > { %v575_v4 = vmul.f32 %v531_v56, %v2353_v22  ;;  %v2447_v5 = vpop.eup %1856  ;;  %v885_v16 = vsel %vm884_vm7, %v2396_v20, %v881_v60  ;;  %v1140_v0 = vadd.f32 %v2434_v59, %v1104_v12 }
  0xc3   : > { %v364_v9 = vpop.xlane.xlu2 %363  ;;  %v891_v19 = vmul.f32 %v2401_v29, %v890_v54  ;;  %v727_v57 = vmul.f32 %v2447_v5, %v2409_v35  ;;  %v622_v21 = vsub.f32 %v558_v2, %v590_v61  ;;  %v1084_v37 = vmul.f32 %v1052_v8, %v885_v16  ;;  %v340_v61 = vld [vmem:[%s2263_s14 + $0x78] sm:$0xff] }
  0xc4   : > { %v639_v23 = vsub.f32 %v575_v4, %v607_v49  ;;  %v2459_v24 = vmul.f32 %v2353_v22, %v364_v9  ;;  %1290 = vmatmul.f32.vlgmr.msra.gmra.mxu0 %v1140_v0  ;;  %1403 = vmatmul.f32.vlgmr.msra.gmra.mxu1 %v1140_v0  ;;  %vm733_vm10 = vweird.f32 %v2447_v5  ;;  %v1037_v49 = vsub.f32 %v2292_v6, %v2386_v63 }
  0xc5   : > { %v728_v62 = vmul.f32 %v2447_v5, %v727_v57  ;;  %v654_v26 = vmax.f32 %v622_v21, 0.0  ;;  %552 = vadd.xlane.f32.xlu0 %v490_v1  ;;  %v895_v30 = vsel %vm2465_vm9, %v2401_v29, %v891_v19  ;;  %v1120_v32 = vmul.f32 %v2423_v52, %v1084_v37  ;;  %vm734_vm12 = vmor %vm732_vm11, %vm733_vm10 }
  0xc6   : > { %v671_v28 = vmax.f32 %v639_v23, 0.0  ;;  %385 = vadd.xlane.f32.xlu1 %v339_v13  ;;  %v591_v29 = vmul.f32 %v2459_v24, %v2459_v24  ;;  %v1085_v43 = vmul.f32 %v1053_v31, %v895_v30  ;;  %v475_v9 = vmul.f32 %v340_v61, %v340_v61 }
  0xc7   : > { %v2476_v33 = vpop.eup %1858  ;;  %v729_v34 = vmul.f32 0.5, %v728_v62  ;;  %v2478_v36 = vadd.f32 1e-05, %v654_v26  ;;  %v1156_v42 = vadd.f32 %v2434_v59, %v1120_v32  ;;  %v1054_v31 = vsub.f32 %v2295_v7, %v2394_v17 }
  0xc8   : > { %v2480_v38 = vadd.f32 1e-05, %v671_v28  ;;  %419 = vadd.xlane.f32.xlu2 %v356_v25  ;;  %v897_v41 = vmul.f32 %v2476_v33, %v2427_v27  ;;  %v398_v3 = vpop.xlane.xlu0 %397  ;;  %v1121_v60 = vmul.f32 %v2423_v52, %v1085_v43  ;;  %vm903_vm13 = vweird.f32 %v2476_v33 }
  0xc9   : > { %v499_v48 = vpop.xlane.xlu1 %498  ;;  %v730_v44 = vsub.f32 1.5, %v729_v34  ;;  %1860 = vrsqrt.f32 %v2478_v36  ;;  %v2492_v50 = vmul.f32 %v2353_v22, %v398_v3  ;;  %1338 = vmatmul.f32.vlgmr.msra.gmra.mxu2 %v1156_v42  ;;  %1451 = vmatmul.f32.vlgmr.msra.gmra.mxu3 %v1156_v42  ;;  %vm904_vm15 = vmor %vm902_vm14, %vm903_vm13  ;;  %vm742_vm1 = vweird.f32 %v2478_v36 }
  0xca   : > { %v898_v47 = vmul.f32 %v2476_v33, %v897_v41  ;;  %1862 = vrsqrt.f32 %v2480_v38  ;;  %v559_v51 = vmul.f32 %v499_v48, %v2353_v22  ;;  %v1157_v21 = vadd.f32 %v2434_v59, %v1121_v60 }
  0xcb   : > { %v533_v1 = vpop.xlane.xlu2 %532  ;;  %v731_v54 = vmul.f32 %v2447_v5, %v730_v44  ;;  %v608_v56 = vmul.f32 %v2492_v50, %v2492_v50  ;;  %vm912_vm4 = vweird.f32 %v2480_v38 }
  0xcc   : > { %v576_v53 = vmul.f32 %v533_v1, %v2353_v22  ;;  %v899_v55 = vmul.f32 0.5, %v898_v47  ;;  %v623_v58 = vsub.f32 %v559_v51, %v591_v29 }
  0xcd   : > { %520 = vadd.xlane.f32.xlu0 %v474_v39  ;;  %v735_v6 = vsel %vm734_vm12, %v2447_v5, %v731_v54 }
  0xce   : > { %554 = vadd.xlane.f32.xlu1 %v491_v45  ;;  %v900_v63 = vsub.f32 1.5, %v899_v55  ;;  %v655_v35 = vmax.f32 %v623_v58, 0.0  ;;  %v640_v2 = vsub.f32 %v576_v53, %v608_v56  ;;  %v1069_v4 = vmul.f32 %v1037_v49, %v735_v6 }
  0xcf   : > { %v2507_v8 = vpop.eup %1860 }
  0xd0   : > { %387 = vadd.xlane.f32.xlu2 %v340_v61  ;;  %v2510_v12 = vpop.eup %1862  ;;  %v737_v13 = vmul.f32 %v2507_v8, %v2478_v36  ;;  %v2514_v16 = vadd.f32 1e-05, %v655_v35  ;;  %v672_v19 = vmax.f32 %v640_v2, 0.0  ;;  %v366_v57 = vpop.xlane.xlu0 %365  ;;  %v1105_v37 = vmul.f32 %v2423_v52, %v1069_v4 }
  0xd1   : > { %v400_v5 = vpop.xlane.xlu1 %399  ;;  %v907_v23 = vmul.f32 %v2510_v12, %v2480_v38  ;;  %v2520_v0 = vmul.f32 %v2353_v22, %v366_v57  ;;  %v901_v25 = vmul.f32 %v2476_v33, %v900_v63  ;;  %1341 = vmatmul.f32.gmra.mxu2 %v1157_v21  ;;  %1454 = vmatmul.f32.gmra.mxu3 %v1157_v21  ;;  %vm743_vm0 = vweird.f32 %v2507_v8 }
  0xd2   : > { %v738_v20 = vmul.f32 %v2507_v8, %v737_v13  ;;  %1864 = vrsqrt.f32 %v2514_v16  ;;  %v2526_v62 = vadd.f32 1e-05, %v672_v19  ;;  %v2536_v34 = vmul.f32 %v2353_v22, %v400_v5  ;;  %vm2556_vm2 = vmor %vm742_vm1, %vm743_vm0 }
  0xd3   : > { %v501_v26 = vpop.xlane.xlu2 %500  ;;  %v908_v28 = vmul.f32 %v2510_v12, %v907_v23  ;;  %v592_v30 = vmul.f32 %v2520_v0, %v2520_v0  ;;  %v1141_v41 = vadd.f32 %v2434_v59, %v1105_v37  ;;  %v905_v29 = vsel %vm904_vm15, %v2476_v33, %v901_v25 }
  0xd4   : > { %v739_v32 = vmul.f32 0.5, %v738_v20  ;;  %1866 = vrsqrt.f32 %v2526_v62  ;;  %v560_v27 = vmul.f32 %v501_v26, %v2353_v22  ;;  %v1086_v48 = vmul.f32 %v1054_v31, %v905_v29 }
  0xd5   : > { %v909_v39 = vmul.f32 0.5, %v908_v28  ;;  %522 = vadd.xlane.f32.xlu0 %v475_v9  ;;  %1293 = vmatmul.f32.gmra.mxu0 %v1141_v41  ;;  %v609_v51 = vmul.f32 %v2536_v34, %v2536_v34  ;;  %vm913_vm3 = vweird.f32 %v2510_v12  ;;  %v1038_v35 = vsub.f32 %v2304_v10, %v2421_v46 }
  0xd6   : > { %v740_v3 = vsub.f32 1.5, %v739_v32  ;;  %v624_v17 = vsub.f32 %v560_v27, %v592_v30  ;;  %1406 = vmatmul.f32.gmra.mxu1 %v1141_v41  ;;  %v1122_v45 = vmul.f32 %v2423_v52, %v1086_v48  ;;  %v1055_v2 = vsub.f32 %v2307_v11, %v2413_v40  ;;  %vm914_vm5 = vmor %vm912_vm4, %vm913_vm3 }
  0xd7   : > { %v910_v7 = vsub.f32 1.5, %v909_v39  ;;  %v1039_v10 = vsub.f32 %v2316_v14, %v2459_v24  ;;  %vm752_vm7 = vweird.f32 %v2514_v16  ;;  %vm922_vm10 = vweird.f32 %v2526_v62 }
  0xd8   : > { %v2544_v42 = vpop.eup %1864  ;;  %v535_v43 = vpop.xlane.xlu0 %534  ;;  %v741_v47 = vmul.f32 %v2507_v8, %v740_v3  ;;  %v656_v1 = vmax.f32 %v624_v17, 0.0  ;;  %v1158_v54 = vadd.f32 %v2434_v59, %v1122_v45 }
  0xd9   : > { %v368_v44 = vpop.xlane.xlu1 %367  ;;  %v747_v33 = vmul.f32 %v2544_v42, %v2514_v16  ;;  %v577_v49 = vmul.f32 %v535_v43, %v2353_v22  ;;  %v911_v58 = vmul.f32 %v2510_v12, %v910_v7  ;;  %vm753_vm6 = vweird.f32 %v2544_v42 }
  0xda   : > { %v2560_v36 = vpop.eup %1866  ;;  %v745_v56 = vsel %vm2556_vm2, %v2507_v8, %v741_v47  ;;  %v2571_v6 = vadd.f32 1e-05, %v656_v1  ;;  %1344 = vmatmul.f32.gmra.mxu2 %v1158_v54  ;;  %1457 = vmatmul.f32.gmra.mxu3 %v1158_v54  ;;  %v2584_v13 = vmul.f32 %v2353_v22, %v368_v44  ;;  %vm754_vm8 = vmor %vm752_vm7, %vm753_vm6 }
  0xdb   : > { %v402_v55 = vpop.xlane.xlu2 %401  ;;  %v748_v60 = vmul.f32 %v2544_v42, %v747_v33  ;;  %v917_v61 = vmul.f32 %v2560_v36, %v2526_v62  ;;  %v641_v63 = vsub.f32 %v577_v49, %v609_v51  ;;  %v1070_v11 = vmul.f32 %v1038_v35, %v745_v56 }
  0xdc   : > { %v2579_v4 = vmul.f32 %v2353_v22, %v402_v55  ;;  %1868 = vrsqrt.f32 %v2571_v6  ;;  %v915_v57 = vsel %vm914_vm5, %v2510_v12, %v911_v58  ;;  %v593_v37 = vmul.f32 %v2584_v13, %v2584_v13 }
  0xdd   : > { %v749_v8 = vmul.f32 0.5, %v748_v60  ;;  %v918_v9 = vmul.f32 %v2560_v36, %v917_v61  ;;  %v673_v46 = vmax.f32 %v641_v63, 0.0  ;;  %v1106_v24 = vmul.f32 %v2423_v52, %v1070_v11 }
  0xde   : > { %v610_v19 = vmul.f32 %v2579_v4, %v2579_v4  ;;  %v1087_v23 = vmul.f32 %v1055_v2, %v915_v57  ;;  %vm923_vm9 = vweird.f32 %v2560_v36  ;;  %v1056_v56 = vsub.f32 %v2320_v15, %v2492_v50 }
  0xdf   : > { %v750_v40 = vsub.f32 1.5, %v749_v8  ;;  %v919_v38 = vmul.f32 0.5, %v918_v9  ;;  %v2595_v5 = vadd.f32 1e-05, %v673_v46  ;;  %v1142_v12 = vadd.f32 %v2434_v59, %v1106_v24  ;;  %vm2628_vm11 = vmor %vm922_vm10, %vm923_vm9 }
  0xe0   : > { %v503_v21 = vpop.xlane.xlu0 %502  ;;  %v1123_v30 = vmul.f32 %v2423_v52, %v1087_v23  ;;  %vm762_vm13 = vweird.f32 %v2571_v6  ;;  %v1040_v57 = vsub.f32 %v2328_v18, %v2520_v0 }
  0xe1   : > { %v537_v14 = vpop.xlane.xlu1 %536  ;;  %v561_v25 = vmul.f32 %v503_v21, %v2353_v22  ;;  %v751_v26 = vmul.f32 %v2544_v42, %v750_v40  ;;  %v920_v28 = vsub.f32 1.5, %v919_v38  ;;  %1870 = vrsqrt.f32 %v2595_v5  ;;  %1296 = vmatmul.f32.gmra.mxu0 %v1142_v12  ;;  %1409 = vmatmul.f32.gmra.mxu1 %v1142_v12 }
  0xe2   : > { %v578_v20 = vmul.f32 %v537_v14, %v2353_v22  ;;  %v2610_v32 = vpop.eup %1868  ;;  %v1159_v48 = vadd.f32 %v2434_v59, %v1123_v30  ;;  %vm932_vm0 = vweird.f32 %v2595_v5 }
  0xe3   : > { %v370_v31 = vpop.xlane.xlu2 %369  ;;  %v625_v39 = vsub.f32 %v561_v25, %v593_v37  ;;  %v755_v29 = vsel %vm754_vm8, %v2544_v42, %v751_v26  ;;  %v757_v3 = vmul.f32 %v2610_v32, %v2571_v6  ;;  %v921_v44 = vmul.f32 %v2560_v36, %v920_v28 }
  0xe4   : > { %v642_v27 = vsub.f32 %v578_v20, %v610_v19  ;;  %v2613_v41 = vmul.f32 %v2353_v22, %v370_v31  ;;  %v1071_v7 = vmul.f32 %v1039_v10, %v755_v29  ;;  %1347 = vmatmul.f32.gmra.mxu2 %v1159_v48  ;;  %1460 = vmatmul.f32.gmra.mxu3 %v1159_v48  ;;  %vm763_vm12 = vweird.f32 %v2610_v32 }
  0xe5   : > { %v657_v16 = vmax.f32 %v625_v39, 0.0  ;;  %v758_v43 = vmul.f32 %v2610_v32, %v757_v3  ;;  %v925_v55 = vsel %vm2628_vm11, %v2560_v36, %v921_v44  ;;  %vm2658_vm14 = vmor %vm762_vm13, %vm763_vm12 }
  0xe6   : > { %v674_v17 = vmax.f32 %v642_v27, 0.0  ;;  %v1107_v42 = vmul.f32 %v2423_v52, %v1071_v7  ;;  %v594_v62 = vmul.f32 %v2613_v41, %v2613_v41  ;;  %v1088_v8 = vmul.f32 %v1056_v56, %v925_v55 }
  0xe7   : > { %v2624_v45 = vadd.f32 1e-05, %v657_v16  ;;  %v2632_v51 = vpop.eup %1870  ;;  %v759_v1 = vmul.f32 0.5, %v758_v43 }
  0xe8   : > { %v2626_v47 = vadd.f32 1e-05, %v674_v17  ;;  %v404_v49 = vpop.xlane.xlu0 %403  ;;  %v1143_v54 = vadd.f32 %v2434_v59, %v1107_v42  ;;  %v927_v58 = vmul.f32 %v2632_v51, %v2595_v5  ;;  %v1124_v10 = vmul.f32 %v2423_v52, %v1088_v8  ;;  %v1914_v17 = vld [vmem:[%s2263_s14 + $0xa8] sm:$0xff] }
  0xe9   : > { %v505_v53 = vpop.xlane.xlu1 %504  ;;  %1872 = vrsqrt.f32 %v2624_v45  ;;  %v760_v60 = vsub.f32 1.5, %v759_v1  ;;  %v2647_v61 = vmul.f32 %v2353_v22, %v404_v49  ;;  %vm933_vm15 = vweird.f32 %v2632_v51  ;;  %v1915_v49 = vld [vmem:[%s2263_s14 + $0x28] sm:$0xff] }
  0xea   : > { %1874 = vrsqrt.f32 %v2626_v47  ;;  %v562_v63 = vmul.f32 %v505_v53, %v2353_v22  ;;  %v928_v2 = vmul.f32 %v2632_v51, %v927_v58  ;;  %1299 = vmatmul.f32.gmra.mxu0 %v1143_v54  ;;  %1412 = vmatmul.f32.gmra.mxu1 %v1143_v54  ;;  %v1160_v21 = vadd.f32 %v2434_v59, %v1124_v10  ;;  %vm934_vm1 = vmor %vm932_vm0, %vm933_vm15 }
  0xeb   : > { %v539_v35 = vpop.xlane.xlu2 %538  ;;  %v611_v15 = vmul.f32 %v2647_v61, %v2647_v61  ;;  %v761_v46 = vmul.f32 %v2610_v32, %v760_v60  ;;  %v1057_v43 = vsub.f32 %v1914_v17, %v2536_v34  ;;  %v1041_v53 = vsub.f32 %v1915_v49, %v2584_v13 }
  0xec   : > { %v579_v36 = vmul.f32 %v539_v35, %v2353_v22  ;;  %v626_v50 = vsub.f32 %v562_v63, %v594_v62  ;;  %v929_v9 = vmul.f32 0.5, %v928_v2  ;;  %1350 = vmatmul.f32.gmra.mxu2 %v1160_v21  ;;  %1463 = vmatmul.f32.gmra.mxu3 %v1160_v21  ;;  %vm772_vm3 = vweird.f32 %v2624_v45 }
  0xed   : > { %v765_v6 = vsel %vm2658_vm14, %v2610_v32, %v761_v46  ;;  %v1916_v46 = vld [vmem:[%s2263_s14 + $0xb0] sm:$0xff]  ;;  %vm942_vm6 = vweird.f32 %v2626_v47 }
  0xee   : > { %v658_v11 = vmax.f32 %v626_v50, 0.0  ;;  %v643_v40 = vsub.f32 %v579_v36, %v611_v15  ;;  %v930_v26 = vsub.f32 1.5, %v929_v9  ;;  %v1072_v28 = vmul.f32 %v1040_v57, %v765_v6  ;;  %v1917_v6 = vld [vmem:[%s2263_s14 + $0x30] sm:$0xff] }
  0xef   : > { %v2662_v19 = vpop.eup %1872 }
  0xf0   : > { %v2670_v14 = vpop.eup %1874  ;;  %v767_v24 = vmul.f32 %v2662_v19, %v2624_v45  ;;  %v2674_v23 = vadd.f32 1e-05, %v658_v11  ;;  %v675_v37 = vmax.f32 %v643_v40, 0.0  ;;  %v372_v25 = vpop.xlane.xlu0 %371  ;;  %v1108_v7 = vmul.f32 %v2423_v52, %v1072_v28 }
  0xf1   : > { %v406_v20 = vpop.xlane.xlu1 %405  ;;  %v937_v18 = vmul.f32 %v2670_v14, %v2626_v47  ;;  %v2679_v0 = vmul.f32 %v2353_v22, %v372_v25  ;;  %v931_v16 = vmul.f32 %v2632_v51, %v930_v26  ;;  %vm773_vm2 = vweird.f32 %v2662_v19 }
  0xf2   : > { %v768_v12 = vmul.f32 %v2662_v19, %v767_v24  ;;  %1876 = vrsqrt.f32 %v2674_v23  ;;  %v2683_v30 = vadd.f32 1e-05, %v675_v37  ;;  %v2692_v29 = vmul.f32 %v2353_v22, %v406_v20  ;;  %vm2715_vm4 = vmor %vm772_vm3, %vm773_vm2 }
  0xf3   : > { %v507_v31 = vpop.xlane.xlu2 %506  ;;  %v938_v32 = vmul.f32 %v2670_v14, %v937_v18  ;;  %v595_v39 = vmul.f32 %v2679_v0, %v2679_v0  ;;  %v1144_v33 = vadd.f32 %v2434_v59, %v1108_v7  ;;  %v935_v1 = vsel %vm934_vm1, %v2632_v51, %v931_v16 }
  0xf4   : > { %v769_v27 = vmul.f32 0.5, %v768_v12  ;;  %1878 = vrsqrt.f32 %v2683_v30  ;;  %v563_v48 = vmul.f32 %v507_v31, %v2353_v22  ;;  %v1089_v34 = vmul.f32 %v1057_v43, %v935_v1 }
  0xf5   : > { %v939_v3 = vmul.f32 0.5, %v938_v32  ;;  %v612_v60 = vmul.f32 %v2692_v29, %v2692_v29  ;;  %1302 = vmatmul.f32.gmra.mxu0 %v1144_v33  ;;  %1415 = vmatmul.f32.gmra.mxu1 %v1144_v33  ;;  %vm943_vm5 = vweird.f32 %v2670_v14  ;;  %v1058_v11 = vsub.f32 %v1916_v46, %v2579_v4 }
  0xf6   : > { %v770_v42 = vsub.f32 1.5, %v769_v27  ;;  %v627_v44 = vsub.f32 %v563_v48, %v595_v39  ;;  %v1125_v35 = vmul.f32 %v2423_v52, %v1089_v34  ;;  %v1042_v24 = vsub.f32 %v1917_v6, %v2613_v41  ;;  %vm944_vm7 = vmor %vm942_vm6, %vm943_vm5 }
  0xf7   : > { %v940_v5 = vsub.f32 1.5, %v939_v3  ;;  %vm782_vm9 = vweird.f32 %v2674_v23  ;;  %vm952_vm12 = vweird.f32 %v2683_v30 }
  0xf8   : > { %v2702_v62 = vpop.eup %1876  ;;  %v541_v54 = vpop.xlane.xlu0 %540  ;;  %v771_v56 = vmul.f32 %v2662_v19, %v770_v42  ;;  %v659_v51 = vmax.f32 %v627_v44, 0.0  ;;  %v1161_v40 = vadd.f32 %v2434_v59, %v1125_v35 }
  0xf9   : > { %v374_v55 = vpop.xlane.xlu1 %373  ;;  %v777_v58 = vmul.f32 %v2702_v62, %v2674_v23  ;;  %v580_v63 = vmul.f32 %v541_v54, %v2353_v22  ;;  %v941_v8 = vmul.f32 %v2670_v14, %v940_v5  ;;  %vm783_vm8 = vweird.f32 %v2702_v62 }
  0xfa   : > { %v2719_v45 = vpop.eup %1878  ;;  %v775_v36 = vsel %vm2715_vm4, %v2662_v19, %v771_v56  ;;  %v2730_v9 = vadd.f32 1e-05, %v659_v51  ;;  %v2742_v21 = vmul.f32 %v2353_v22, %v374_v55  ;;  %1353 = vmatmul.f32.gmra.mxu2 %v1161_v40  ;;  %1466 = vmatmul.f32.gmra.mxu3 %v1161_v40  ;;  %vm784_vm10 = vmor %vm782_vm9, %vm783_vm8 }
  0xfb   : > { %v408_v2 = vpop.xlane.xlu2 %407  ;;  %v778_v15 = vmul.f32 %v2702_v62, %v777_v58  ;;  %v947_v50 = vmul.f32 %v2719_v45, %v2683_v30  ;;  %v644_v10 = vsub.f32 %v580_v63, %v612_v60  ;;  %v1073_v4 = vmul.f32 %v1041_v53, %v775_v36  ;;  %v1918_v36 = vld [vmem:[%s2263_s14 + $0xb8] sm:$0xff] }
  0xfc   : > { %v2737_v38 = vmul.f32 %v2353_v22, %v408_v2  ;;  %1880 = vrsqrt.f32 %v2730_v9  ;;  %v945_v26 = vsel %vm944_vm7, %v2670_v14, %v941_v8  ;;  %v596_v32 = vmul.f32 %v2742_v21, %v2742_v21 }
  0xfd   : > { %v779_v19 = vmul.f32 0.5, %v778_v15  ;;  %v948_v57 = vmul.f32 %v2719_v45, %v947_v50  ;;  %v676_v37 = vmax.f32 %v644_v10, 0.0  ;;  %v1109_v12 = vmul.f32 %v2423_v52, %v1073_v4 }
  0xfe   : > { %v613_v20 = vmul.f32 %v2737_v38, %v2737_v38  ;;  %v1090_v31 = vmul.f32 %v1058_v11, %v945_v26  ;;  %vm953_vm11 = vweird.f32 %v2719_v45  ;;  %v1059_v8 = vsub.f32 %v1918_v36, %v2647_v61  ;;  %v1919_v26 = vld [vmem:[%s2263_s14 + $0x38] sm:$0xff] }
  0xff   : > { %v780_v47 = vsub.f32 1.5, %v779_v19  ;;  %v949_v25 = vmul.f32 0.5, %v948_v57  ;;  %v2753_v18 = vadd.f32 1e-05, %v676_v37  ;;  %v1145_v14 = vadd.f32 %v2434_v59, %v1109_v12  ;;  %vm2786_vm13 = vmor %vm952_vm12, %vm953_vm11 }
 0x100   : > { %v509_v41 = vpop.xlane.xlu0 %508  ;;  %v1126_v7 = vmul.f32 %v2423_v52, %v1090_v31  ;;  %vm792_vm15 = vweird.f32 %v2730_v9 }
 0x101   : > { %v543_v28 = vpop.xlane.xlu1 %542  ;;  %v564_v39 = vmul.f32 %v509_v41, %v2353_v22  ;;  %v781_v3 = vmul.f32 %v2702_v62, %v780_v47  ;;  %v950_v48 = vsub.f32 1.5, %v949_v25  ;;  %1882 = vrsqrt.f32 %v2753_v18  ;;  %1305 = vmatmul.f32.gmra.mxu0 %v1145_v14  ;;  %1418 = vmatmul.f32.gmra.mxu1 %v1145_v14 }
 0x102   : > { %v581_v27 = vmul.f32 %v543_v28, %v2353_v22  ;;  %v2768_v17 = vpop.eup %1880  ;;  %v1162_v1 = vadd.f32 %v2434_v59, %v1126_v7  ;;  %v1043_v41 = vsub.f32 %v1919_v26, %v2679_v0  ;;  %vm962_vm2 = vweird.f32 %v2753_v18 }
 0x103   : > { %v376_v16 = vpop.xlane.xlu2 %375  ;;  %v628_v43 = vsub.f32 %v564_v39, %v596_v32  ;;  %v785_v44 = vsel %vm784_vm10, %v2702_v62, %v781_v3  ;;  %v787_v33 = vmul.f32 %v2768_v17, %v2730_v9  ;;  %v951_v55 = vmul.f32 %v2719_v45, %v950_v48 }
 0x104   : > { %v645_v42 = vsub.f32 %v581_v27, %v613_v20  ;;  %v2771_v5 = vmul.f32 %v2353_v22, %v376_v16  ;;  %v1074_v49 = vmul.f32 %v1042_v24, %v785_v44  ;;  %1356 = vmatmul.f32.gmra.mxu2 %v1162_v1  ;;  %1469 = vmatmul.f32.gmra.mxu3 %v1162_v1  ;;  %vm793_vm14 = vweird.f32 %v2768_v17 }
 0x105   : > { %v660_v23 = vmax.f32 %v628_v43, 0.0  ;;  %v788_v54 = vmul.f32 %v2768_v17, %v787_v33  ;;  %v955_v2 = vsel %vm2786_vm13, %v2719_v45, %v951_v55  ;;  %vm2816_vm0 = vmor %vm792_vm15, %vm793_vm14 }
 0x106   : > { %v677_v53 = vmax.f32 %v645_v42, 0.0  ;;  %v1110_v62 = vmul.f32 %v2423_v52, %v1074_v49  ;;  %v597_v51 = vmul.f32 %v2771_v5, %v2771_v5  ;;  %v1091_v61 = vmul.f32 %v1059_v8, %v955_v2 }
 0x107   : > { %v2782_v34 = vadd.f32 1e-05, %v660_v23  ;;  %v2790_v60 = vpop.eup %1882  ;;  %v789_v30 = vmul.f32 0.5, %v788_v54 }
 0x108   : > { %v2784_v56 = vadd.f32 1e-05, %v677_v53  ;;  %v410_v63 = vpop.xlane.xlu0 %409  ;;  %v1146_v35 = vadd.f32 %v2434_v59, %v1110_v62  ;;  %v957_v15 = vmul.f32 %v2790_v60, %v2753_v18  ;;  %v1127_v24 = vmul.f32 %v2423_v52, %v1091_v61  ;;  %v1920_v62 = vld [vmem:[%s2263_s14 + $0xc0] sm:$0xff] }
 0x109   : > { %v511_v13 = vpop.xlane.xlu1 %510  ;;  %1884 = vrsqrt.f32 %v2782_v34  ;;  %v790_v50 = vsub.f32 1.5, %v789_v30  ;;  %v2805_v10 = vmul.f32 %v2353_v22, %v410_v63  ;;  %vm963_vm1 = vweird.f32 %v2790_v60 }
 0x10a   : > { %1886 = vrsqrt.f32 %v2784_v56  ;;  %v565_v46 = vmul.f32 %v511_v13, %v2353_v22  ;;  %v958_v40 = vmul.f32 %v2790_v60, %v957_v15  ;;  %1308 = vmatmul.f32.gmra.mxu0 %v1146_v35  ;;  %1421 = vmatmul.f32.gmra.mxu1 %v1146_v35  ;;  %v1163_v28 = vadd.f32 %v2434_v59, %v1127_v24  ;;  %vm964_vm3 = vmor %vm962_vm2, %vm963_vm1  ;;  %v1921_v35 = vld [vmem:[%s2263_s14 + $0x40] sm:$0xff] }
 0x10b   : > { %v545_v11 = vpop.xlane.xlu2 %544  ;;  %v614_v19 = vmul.f32 %v2805_v10, %v2805_v10  ;;  %v791_v37 = vmul.f32 %v2768_v17, %v790_v50  ;;  %v1060_v55 = vsub.f32 %v1920_v62, %v2692_v29  ;;  %v1044_v2 = vsub.f32 %v1921_v35, %v2742_v21 }
 0x10c   : > { %v582_v45 = vmul.f32 %v545_v11, %v2353_v22  ;;  %v629_v57 = vsub.f32 %v565_v46, %v597_v51  ;;  %v959_v6 = vmul.f32 0.5, %v958_v40  ;;  %1359 = vmatmul.f32.gmra.mxu2 %v1163_v28  ;;  %1472 = vmatmul.f32.gmra.mxu3 %v1163_v28  ;;  %vm802_vm5 = vweird.f32 %v2782_v34 }
 0x10d   : > { %v795_v9 = vsel %vm2816_vm0, %v2768_v17, %v791_v37  ;;  %vm972_vm8 = vweird.f32 %v2784_v56 }
 0x10e   : > { %v661_v4 = vmax.f32 %v629_v57, 0.0  ;;  %v646_v47 = vsub.f32 %v582_v45, %v614_v19  ;;  %v960_v48 = vsub.f32 1.5, %v959_v6  ;;  %v1075_v7 = vmul.f32 %v1043_v41, %v795_v9  ;;  %v1923_v9 = vld [vmem:[%s2263_s14 + $0x48] sm:$0xff] }
 0x10f   : > { %v2820_v20 = vpop.eup %1884 }
 0x110   : > { %v2828_v12 = vpop.eup %1886  ;;  %v797_v31 = vmul.f32 %v2820_v20, %v2782_v34  ;;  %v2832_v32 = vadd.f32 1e-05, %v661_v4  ;;  %v678_v39 = vmax.f32 %v646_v47, 0.0  ;;  %v378_v27 = vpop.xlane.xlu0 %377  ;;  %v1111_v53 = vmul.f32 %v2423_v52, %v1075_v7  ;;  %v1922_v4 = vld [vmem:[%s2263_s14 + $0xc8] sm:$0xff] }
 0x111   : > { %v412_v3 = vpop.xlane.xlu1 %411  ;;  %v967_v0 = vmul.f32 %v2828_v12, %v2784_v56  ;;  %v2837_v14 = vmul.f32 %v2353_v22, %v378_v27  ;;  %v961_v54 = vmul.f32 %v2790_v60, %v960_v48  ;;  %vm803_vm4 = vweird.f32 %v2820_v20 }
 0x112   : > { %v798_v16 = vmul.f32 %v2820_v20, %v797_v31  ;;  %1888 = vrsqrt.f32 %v2832_v32  ;;  %v2841_v17 = vadd.f32 1e-05, %v678_v39  ;;  %v2850_v1 = vmul.f32 %v2353_v22, %v412_v3  ;;  %vm2873_vm6 = vmor %vm802_vm5, %vm803_vm4 }
 0x113   : > { %v513_v43 = vpop.xlane.xlu2 %512  ;;  %v968_v42 = vmul.f32 %v2828_v12, %v967_v0  ;;  %v598_v44 = vmul.f32 %v2837_v14, %v2837_v14  ;;  %v1147_v51 = vadd.f32 %v2434_v59, %v1111_v53  ;;  %v965_v63 = vsel %vm964_vm3, %v2790_v60, %v961_v54 }
 0x114   : > { %v799_v33 = vmul.f32 0.5, %v798_v16  ;;  %1890 = vrsqrt.f32 %v2841_v17  ;;  %v566_v23 = vmul.f32 %v513_v43, %v2353_v22  ;;  %v1092_v29 = vmul.f32 %v1060_v55, %v965_v63 }
 0x115   : > { %v969_v49 = vmul.f32 0.5, %v968_v42  ;;  %v615_v46 = vmul.f32 %v2850_v1, %v2850_v1  ;;  %1311 = vmatmul.f32.gmra.mxu0 %v1147_v51  ;;  %1424 = vmatmul.f32.gmra.mxu1 %v1147_v51  ;;  %vm973_vm7 = vweird.f32 %v2828_v12  ;;  %v1061_v47 = vsub.f32 %v1922_v4, %v2737_v38 }
 0x116   : > { %v800_v58 = vsub.f32 1.5, %v799_v33  ;;  %v630_v30 = vsub.f32 %v566_v23, %v598_v44  ;;  %v1128_v40 = vmul.f32 %v2423_v52, %v1092_v29  ;;  %v1045_v31 = vsub.f32 %v1923_v9, %v2771_v5  ;;  %vm974_vm9 = vmor %vm972_vm8, %vm973_vm7 }
 0x117   : > { %v970_v18 = vsub.f32 1.5, %v969_v49  ;;  %vm812_vm11 = vweird.f32 %v2832_v32  ;;  %vm982_vm14 = vweird.f32 %v2841_v17 }
 0x118   : > { %v2860_v13 = vpop.eup %1888  ;;  %v547_v36 = vpop.xlane.xlu0 %546  ;;  %v801_v15 = vmul.f32 %v2820_v20, %v800_v58  ;;  %v662_v60 = vmax.f32 %v630_v30, 0.0  ;;  %v1164_v25 = vadd.f32 %v2434_v59, %v1128_v40 }
 0x119   : > { %v380_v8 = vpop.xlane.xlu1 %379  ;;  %v807_v50 = vmul.f32 %v2860_v13, %v2832_v32  ;;  %v583_v11 = vmul.f32 %v547_v36, %v2353_v22  ;;  %v971_v19 = vmul.f32 %v2828_v12, %v970_v18  ;;  %vm813_vm10 = vweird.f32 %v2860_v13 }
 0x11a   : > { %v2877_v34 = vpop.eup %1890  ;;  %v805_v61 = vsel %vm2873_vm6, %v2820_v20, %v801_v15  ;;  %v2888_v24 = vadd.f32 1e-05, %v662_v60  ;;  %v2900_v28 = vmul.f32 %v2353_v22, %v380_v8  ;;  %1362 = vmatmul.f32.gmra.mxu2 %v1164_v25  ;;  %1475 = vmatmul.f32.gmra.mxu3 %v1164_v25  ;;  %vm814_vm12 = vmor %vm812_vm11, %vm813_vm10 }
 0x11b   : > { %v414_v45 = vpop.xlane.xlu2 %413  ;;  %v808_v57 = vmul.f32 %v2860_v13, %v807_v50  ;;  %v977_v6 = vmul.f32 %v2877_v34, %v2841_v17  ;;  %v647_v37 = vsub.f32 %v583_v11, %v615_v46  ;;  %v1076_v38 = vmul.f32 %v1044_v2, %v805_v61  ;;  %v1268_v50 = vld [vmem:[%s3372_s4] sm:$0x3] }
 0x11c   : > { %v2895_v20 = vmul.f32 %v2353_v22, %v414_v45  ;;  %1892 = vrsqrt.f32 %v2888_v24  ;;  %v975_v48 = vsel %vm974_vm9, %v2828_v12, %v971_v19  ;;  %v599_v42 = vmul.f32 %v2900_v28, %v2900_v28  ;;  %v1924_v45 = vld [vmem:[%s2263_s14 + $0xd0] sm:$0xff] }
 0x11d   : > { %v809_v26 = vmul.f32 0.5, %v808_v57  ;;  %v978_v41 = vmul.f32 %v2877_v34, %v977_v6  ;;  %v679_v39 = vmax.f32 %v647_v37, 0.0  ;;  %v1112_v16 = vmul.f32 %v2423_v52, %v1076_v38 }
 0x11e   : > { %v616_v3 = vmul.f32 %v2895_v20, %v2895_v20  ;;  %v1093_v43 = vmul.f32 %v1061_v47, %v975_v48  ;;  %vm983_vm13 = vweird.f32 %v2877_v34  ;;  %v1062_v61 = vsub.f32 %v1924_v45, %v2805_v10 }
 0x11f   : > { %v810_v56 = vsub.f32 1.5, %v809_v26  ;;  %v979_v27 = vmul.f32 0.5, %v978_v41  ;;  %v2911_v0 = vadd.f32 1e-05, %v679_v39  ;;  %v1148_v12 = vadd.f32 %v2434_v59, %v1112_v16  ;;  %vm2944_vm15 = vmor %vm982_vm14, %vm983_vm13  ;;  %v2972_v41 = vld [vmem:[#allocation6] ss:$0 sm:$0xff] }
 0x120   : > { %v515_v5 = vpop.xlane.xlu0 %514  ;;  %v1129_v53 = vmul.f32 %v2423_v52, %v1093_v43  ;;  %vm822_vm1 = vweird.f32 %v2888_v24 }
 0x121   : > { %v549_v7 = vpop.xlane.xlu1 %548  ;;  %v567_v44 = vmul.f32 %v515_v5, %v2353_v22  ;;  %v811_v49 = vmul.f32 %v2860_v13, %v810_v56  ;;  %v980_v23 = vsub.f32 1.5, %v979_v27  ;;  %1894 = vrsqrt.f32 %v2911_v0  ;;  %1314 = vmatmul.f32.gmra.mxu0 %v1148_v12  ;;  %1427 = vmatmul.f32.gmra.mxu1 %v1148_v12 }
 0x122   : > { %v584_v33 = vmul.f32 %v549_v7, %v2353_v22  ;;  %v2926_v62 = vpop.eup %1892  ;;  %v1165_v63 = vadd.f32 %v2434_v59, %v1129_v53  ;;  %vm992_vm4 = vweird.f32 %v2911_v0 }
 0x123   : > { %v382_v54 = vpop.xlane.xlu2 %381  ;;  %v631_v55 = vsub.f32 %v567_v44, %v599_v42  ;;  %v815_v30 = vsel %vm814_vm12, %v2860_v13, %v811_v49  ;;  %v817_v51 = vmul.f32 %v2926_v62, %v2888_v24  ;;  %v981_v8 = vmul.f32 %v2877_v34, %v980_v23  ;;  %v2987_v24 = vld [vmem:[%s3370_s2] ss:$0 sm:$0xff] }
 0x124   : > { %v648_v58 = vsub.f32 %v584_v33, %v616_v3  ;;  %v2929_v18 = vmul.f32 %v2353_v22, %v382_v54  ;;  %v1077_v35 = vmul.f32 %v1045_v31, %v815_v30  ;;  %1365 = vmatmul.f32.gmra.mxu2 %v1165_v63  ;;  %1478 = vmatmul.f32.gmra.mxu3 %v1165_v63  ;;  %vm823_vm0 = vweird.f32 %v2926_v62  ;;  %v1926_v3 = vld [vmem:[%s2263_s14 + $0x50] sm:$0xff]  ;;  %v1928_v54 = vld [vmem:[%s2263_s14 + $0xd8] sm:$0xff] }
 0x125   : > { %v663_v32 = vmax.f32 %v631_v55, 0.0  ;;  %v818_v36 = vmul.f32 %v2926_v62, %v817_v51  ;;  %v985_v40 = vsel %vm2944_vm15, %v2877_v34, %v981_v8  ;;  %vm2976_vm2 = vmor %vm822_vm1, %vm823_vm0  ;;  %v1046_v48 = vsub.f32 %v1926_v3, %v2837_v14  ;;  %v1929_v51 = vld [vmem:[%s2263_s14 + $0x58] sm:$0xff] }
 0x126   : > { %v680_v2 = vmax.f32 %v648_v58, 0.0  ;;  %v1113_v13 = vmul.f32 %v2423_v52, %v1077_v35  ;;  %v600_v60 = vmul.f32 %v2929_v18, %v2929_v18  ;;  %v1094_v10 = vmul.f32 %v1062_v61, %v985_v40 }
 0x127   : > { %v2940_v29 = vadd.f32 1e-05, %v663_v32  ;;  %v2948_v46 = vpop.eup %1894  ;;  %v819_v17 = vmul.f32 0.5, %v818_v36  ;;  %v1047_v63 = vsub.f32 %v1929_v51, %v2900_v28 }
 0x128   : > { %v2942_v15 = vadd.f32 1e-05, %v680_v2  ;;  %v416_v11 = vpop.xlane.xlu0 %415  ;;  %v1149_v52 = vadd.f32 %v2434_v59, %v1113_v13  ;;  %v987_v19 = vmul.f32 %v2948_v46, %v2911_v0  ;;  %v1130_v9 = vmul.f32 %v2972_v41, %v1094_v10 }
 0x129   : > { %v517_v21 = vpop.xlane.xlu1 %516  ;;  %1896 = vrsqrt.f32 %v2940_v29  ;;  %v820_v57 = vsub.f32 1.5, %v819_v17  ;;  %v2963_v6 = vmul.f32 %v2353_v22, %v416_v11  ;;  %vm993_vm3 = vweird.f32 %v2948_v46  ;;  %v1930_v17 = vld [vmem:[%s2263_s14 + $0xe0] sm:$0xff] }
 0x12a   : > { %1898 = vrsqrt.f32 %v2942_v15  ;;  %v568_v59 = vmul.f32 %v517_v21, %v2353_v22  ;;  %v988_v4 = vmul.f32 %v2948_v46, %v987_v19  ;;  %1317 = vmatmul.f32.gmra.mxu0 %v1149_v52  ;;  %1430 = vmatmul.f32.gmra.mxu1 %v1149_v52  ;;  %v1166_v5 = vadd.f32 %v2987_v24, %v1130_v9  ;;  %v3030_v11 = vld [vmem:[%s2263_s14 + $0x60] sm:$0xff]  ;;  %vm994_vm5 = vmor %vm992_vm4, %vm993_vm3 }
 0x12b   : > { %v551_v37 = vpop.xlane.xlu2 %550  ;;  %v617_v47 = vmul.f32 %v2963_v6, %v2963_v6  ;;  %v821_v31 = vmul.f32 %v2926_v62, %v820_v57  ;;  %v1064_v0 = vsub.f32 %v1930_v17, %v2895_v20  ;;  %v1048_v21 = vsub.f32 %v3030_v11, %v2929_v18 }
 0x12c   : > { %v585_v34 = vmul.f32 %v551_v37, %v2353_v22  ;;  %v632_v25 = vsub.f32 %v568_v59, %v600_v60  ;;  %v989_v26 = vmul.f32 0.5, %v988_v4  ;;  %1368 = vmatmul.f32.gmra.mxu2 %v1166_v5  ;;  %1481 = vmatmul.f32.gmra.mxu3 %v1166_v5  ;;  %vm832_vm7 = vweird.f32 %v2940_v29 }
 0x12d   : > { %v825_v7 = vsel %vm2976_vm2, %v2926_v62, %v821_v31  ;;  %v1063_v62 = vsub.f32 %v1928_v54, %v2850_v1  ;;  %v3042_v37 = vperm.slane %v1268_v50, 0  ;;  %vm1002_vm10 = vweird.f32 %v2942_v15 }
 0x12e   : > { %v664_v39 = vmax.f32 %v632_v25, 0.0  ;;  %v649_v38 = vsub.f32 %v585_v34, %v617_v47  ;;  %v990_v49 = vsub.f32 1.5, %v989_v26  ;;  %v1078_v53 = vmul.f32 %v1046_v48, %v825_v7 }
 0x12f   : > { %v2980_v27 = vpop.eup %1896 }
 0x130   : > { %v2993_v16 = vpop.eup %1898  ;;  %v827_v43 = vmul.f32 %v2980_v27, %v2940_v29  ;;  %v2997_v42 = vadd.f32 1e-05, %v664_v39  ;;  %v681_v14 = vmax.f32 %v649_v38, 0.0  ;;  %v384_v44 = vpop.xlane.xlu0 %383  ;;  %v1114_v28 = vmul.f32 %v2972_v41, %v1078_v53 }
 0x131   : > { %v418_v33 = vpop.xlane.xlu1 %417  ;;  %v997_v23 = vmul.f32 %v2993_v16, %v2942_v15  ;;  %v3002_v12 = vmul.f32 %v2353_v22, %v384_v44  ;;  %v991_v8 = vmul.f32 %v2948_v46, %v990_v49  ;;  %vm833_vm6 = vweird.f32 %v2980_v27 }
 0x132   : > { %v828_v55 = vmul.f32 %v2980_v27, %v827_v43  ;;  %1900 = vrsqrt.f32 %v2997_v42  ;;  %v3008_v58 = vadd.f32 1e-05, %v681_v14  ;;  %v3019_v2 = vmul.f32 %v2353_v22, %v418_v33  ;;  %vm3052_vm8 = vmor %vm832_vm7, %vm833_vm6 }
 0x133   : > { %v519_v30 = vpop.xlane.xlu2 %518  ;;  %v998_v35 = vmul.f32 %v2993_v16, %v997_v23  ;;  %v601_v32 = vmul.f32 %v3002_v12, %v3002_v12  ;;  %v1150_v45 = vadd.f32 %v2987_v24, %v1114_v28  ;;  %v995_v61 = vsel %vm994_vm5, %v2948_v46, %v991_v8 }
 0x134   : > { %v829_v1 = vmul.f32 0.5, %v828_v55  ;;  %1902 = vrsqrt.f32 %v3008_v58  ;;  %v569_v13 = vmul.f32 %v519_v30, %v2353_v22  ;;  %v1095_v59 = vmul.f32 %v1063_v62, %v995_v61 }
 0x135   : > { %v999_v36 = vmul.f32 0.5, %v998_v35  ;;  %v618_v10 = vmul.f32 %v3019_v2, %v3019_v2  ;;  %1320 = vmatmul.f32.gmra.mxu0 %v1150_v45  ;;  %1433 = vmatmul.f32.gmra.mxu1 %v1150_v45  ;;  %vm1003_vm9 = vweird.f32 %v2993_v16  ;;  %vm842_vm11 = vweird.f32 %v2997_v42 }
 0x136   : > { %v830_v60 = vsub.f32 1.5, %v829_v1  ;;  %v633_v40 = vsub.f32 %v569_v13, %v601_v32  ;;  %v1131_v26 = vmul.f32 %v2972_v41, %v1095_v59  ;;  %vm1004_vm12 = vmor %vm1002_vm10, %vm1003_vm9  ;;  %vm1012_vm0 = vweird.f32 %v3008_v58 }
 0x137   : > { %v1000_v52 = vsub.f32 1.5, %v999_v36 }
 0x138   : > { %v3039_v19 = vpop.eup %1900  ;;  %v553_v20 = vpop.xlane.xlu0 %552  ;;  %v831_v4 = vmul.f32 %v2980_v27, %v830_v60  ;;  %v665_v47 = vmax.f32 %v633_v40, 0.0  ;;  %v1167_v7 = vadd.f32 %v2987_v24, %v1131_v26 }
 0x139   : > { %v386_v57 = vpop.xlane.xlu1 %385  ;;  %v837_v34 = vmul.f32 %v3039_v19, %v2997_v42  ;;  %v586_v46 = vmul.f32 %v553_v20, %v2353_v22  ;;  %v1001_v39 = vmul.f32 %v2993_v16, %v1000_v52  ;;  %vm843_vm13 = vweird.f32 %v3039_v19 }
 0x13a   : > { %v3056_v25 = vpop.eup %1902  ;;  %v835_v31 = vsel %vm3052_vm8, %v2980_v27, %v831_v4  ;;  %v3067_v3 = vadd.f32 1e-05, %v665_v47  ;;  %v3070_v5 = vmul.f32 %v2353_v22, %v386_v57  ;;  %v3076_v27 = vperm.slane %v1268_v50, 1  ;;  %1371 = vmatmul.f32.gmra.mxu2 %v1167_v7  ;;  %1484 = vmatmul.f32.gmra.mxu3 %v1167_v7  ;;  %vm3105_vm15 = vmor %vm842_vm11, %vm843_vm13  ;;  %v1934_v50 = vld [vmem:[%s2263_s14 + $0xf0] sm:$0xff] }
 0x13b   : > { %v420_v9 = vpop.xlane.xlu2 %419  ;;  %v838_v38 = vmul.f32 %v3039_v19, %v837_v34  ;;  %v1007_v56 = vmul.f32 %v3056_v25, %v3008_v58  ;;  %v650_v48 = vsub.f32 %v586_v46, %v618_v10  ;;  %v1079_v49 = vmul.f32 %v1047_v63, %v835_v31 }
 0x13c   : > { %v3074_v43 = vmul.f32 %v2353_v22, %v420_v9  ;;  %1904 = vrsqrt.f32 %v3067_v3  ;;  %v1005_v54 = vsel %vm1004_vm12, %v2993_v16, %v1001_v39  ;;  %v602_v55 = vmul.f32 %v3070_v5, %v3070_v5  ;;  %v1932_v39 = vld [vmem:[%s2263_s14 + $0xe8] sm:$0xff] }
 0x13d   : > { %v839_v14 = vmul.f32 0.5, %v838_v38  ;;  %v1008_v44 = vmul.f32 %v3056_v25, %v1007_v56  ;;  %v682_v33 = vmax.f32 %v650_v48, 0.0  ;;  %v1115_v63 = vmul.f32 %v2972_v41, %v1079_v49  ;;  %v1933_v49 = vld [vmem:[%s2263_s14 + $0x68] sm:$0xff] }
 0x13e   : > { %v619_v15 = vmul.f32 %v3074_v43, %v3074_v43  ;;  %v1096_v35 = vmul.f32 %v1064_v0, %v1005_v54  ;;  %vm1013_vm14 = vweird.f32 %v3056_v25  ;;  %v1065_v38 = vsub.f32 %v1932_v39, %v2963_v6 }
 0x13f   : > { %v840_v23 = vsub.f32 1.5, %v839_v14  ;;  %v1009_v53 = vmul.f32 0.5, %v1008_v44  ;;  %v3088_v62 = vadd.f32 1e-05, %v682_v33  ;;  %v1151_v13 = vadd.f32 %v2987_v24, %v1115_v63  ;;  %vm3138_vm1 = vmor %vm1012_vm0, %vm1013_vm14 }
 0x140   : > { %v521_v30 = vpop.xlane.xlu0 %520  ;;  %v1132_v28 = vmul.f32 %v2972_v41, %v1096_v35  ;;  %vm852_vm3 = vweird.f32 %v3067_v3 }
 0x141   : > { %v555_v51 = vpop.xlane.xlu1 %554  ;;  %v570_v32 = vmul.f32 %v521_v30, %v2353_v22  ;;  %v841_v36 = vmul.f32 %v3039_v19, %v840_v23  ;;  %v1010_v16 = vsub.f32 1.5, %v1009_v53  ;;  %1906 = vrsqrt.f32 %v3088_v62  ;;  %v1291_v52 = vpop.f32.mrf.mxu0  ;;  %1323 = vmatmul.f32.gmra.mxu0 %v1151_v13  ;;  %1436 = vmatmul.f32.gmra.mxu1 %v1151_v13 }
 0x142   : > { %v587_v1 = vmul.f32 %v555_v51, %v2353_v22  ;;  %v3109_v17 = vpop.eup %1904  ;;  %v1404_v40 = vpop.f32.mrf.mxu1  ;;  %v1292_v20 = vadd.f32 %v1291_v52, %v3042_v37  ;;  %v1168_v59 = vadd.f32 %v2987_v24, %v1132_v28  ;;  %v1049_v23 = vsub.f32 %v1933_v49, %v3002_v12 }
 0x143   : > { %v388_v8 = vpop.xlane.xlu2 %387  ;;  %v634_v0 = vsub.f32 %v570_v32, %v602_v55  ;;  %v845_v61 = vsel %vm3105_vm15, %v3039_v19, %v841_v36  ;;  %v847_v42 = vmul.f32 %v3109_v17, %v3067_v3  ;;  %v1405_v57 = vadd.f32 %v1404_v40, %v3076_v27 }
 0x144   : > { %v651_v60 = vsub.f32 %v587_v1, %v619_v15  ;;  %v3112_v45 = vmul.f32 %v2353_v22, %v388_v8  ;;  %1500 = vst [vmem:[%s3124_s8] sm:$0xff] %v1292_v20  ;;  %1374 = vmatmul.f32.gmra.mxu2 %v1168_v59  ;;  %1487 = vmatmul.f32.gmra.mxu3 %v1168_v59  ;;  %vm853_vm2 = vweird.f32 %v3109_v17  ;;  %vm1022_vm6 = vweird.f32 %v3088_v62 }
 0x145   : > { %v666_v4 = vmax.f32 %v634_v0, 0.0  ;;  %v848_v10 = vmul.f32 %v3109_v17, %v847_v42  ;;  %v1080_v19 = vmul.f32 %v1048_v21, %v845_v61  ;;  %v1011_v47 = vmul.f32 %v3056_v25, %v1010_v16  ;;  %1501 = vst [vmem:[%s3124_s8 + $0x8] sm:$0xff] %v1405_v57  ;;  %vm854_vm4 = vmor %vm852_vm3, %vm853_vm2 }
 0x146   : > { %v683_v34 = vmax.f32 %v651_v60, 0.0  ;;  %v603_v31 = vmul.f32 %v3112_v45, %v3112_v45 }
 0x147   : > { %v3131_v58 = vadd.f32 1e-05, %v666_v4  ;;  %v1907_v26 = vpop.eup %1906  ;;  %v849_v9 = vmul.f32 0.5, %v848_v10  ;;  %v1116_v11 = vmul.f32 %v2972_v41, %v1080_v19  ;;  %v1015_v21 = vsel %vm3138_vm1, %v3056_v25, %v1011_v47 }
 0x148   : > { %v3133_v46 = vadd.f32 1e-05, %v683_v34  ;;  %v523_v18 = vpop.xlane.xlu0 %522  ;;  %v1017_v56 = vmul.f32 %v1907_v26, %v3088_v62  ;;  %v1097_v33 = vmul.f32 %v1065_v38, %v1015_v21  ;;  %vm1023_vm5 = vweird.f32 %v1907_v26 }
 0x149   : > { %1908 = vrsqrt.f32 %v3131_v58  ;;  %v850_v48 = vsub.f32 1.5, %v849_v9  ;;  %v571_v7 = vmul.f32 %v523_v18, %v2353_v22  ;;  %v1152_v14 = vadd.f32 %v2987_v24, %v1116_v11  ;;  %vm1024_vm7 = vmor %vm1022_vm6, %vm1023_vm5  ;;  %v1935_v11 = vld [vmem:[%s2263_s14 + $0x70] sm:$0xff] }
 0x14a   : > { %1910 = vrsqrt.f32 %v3133_v46  ;;  %v1018_v44 = vmul.f32 %v1907_v26, %v1017_v56  ;;  %v1133_v15 = vmul.f32 %v2972_v41, %v1097_v33  ;;  %vm862_vm10 = vweird.f32 %v3131_v58  ;;  %v1936_v56 = vld [vmem:[%s2263_s14 + $0xf8] sm:$0xff] }
 0x14b   : > { %v635_v25 = vsub.f32 %v571_v7, %v603_v31  ;;  %1326 = vmatmul.f32.gmra.mxu0 %v1152_v14  ;;  %v851_v6 = vmul.f32 %v3109_v17, %v850_v48  ;;  %1439 = vmatmul.f32.gmra.mxu1 %v1152_v14  ;;  %v1050_v21 = vsub.f32 %v1935_v11, %v3070_v5  ;;  %vm1032_vm11 = vweird.f32 %v3133_v46 }
 0x14c   : > { %v1019_v53 = vmul.f32 0.5, %v1018_v44  ;;  %v1339_v54 = vpop.f32.mrf.mxu2  ;;  %v1452_v22 = vpop.f32.mrf.mxu3  ;;  %v1169_v35 = vadd.f32 %v2987_v24, %v1133_v15 }
 0x14d   : > { %v667_v55 = vmax.f32 %v635_v25, 0.0  ;;  %v1340_v3 = vadd.f32 %v1339_v54, %v3042_v37  ;;  %v1453_v30 = vadd.f32 %v1452_v22, %v3076_v27  ;;  %v855_v51 = vsel %vm854_vm4, %v3109_v17, %v851_v6 }
 0x14e   : > { %v1020_v12 = vsub.f32 1.5, %v1019_v53  ;;  %v1081_v32 = vmul.f32 %v1049_v23, %v855_v51  ;;  %1377 = vmatmul.f32.gmra.mxu2 %v1169_v35  ;;  %1490 = vmatmul.f32.gmra.mxu3 %v1169_v35  ;;  %v1066_v17 = vsub.f32 %v1934_v50, %v3019_v2 }
 0x14f   : > { %v3166_v63 = vpop.eup %1908  ;;  %v3172_v16 = vadd.f32 1e-05, %v667_v55  ;;  %1532 = vst [vmem:[%s3124_s8 + $0x100] sm:$0xff] %v1340_v3 }
 0x150   : > { %v1911_v1 = vpop.eup %1910  ;;  %v857_v36 = vmul.f32 %v3166_v63, %v3131_v58  ;;  %1533 = vst [vmem:[%s3124_s8 + $0x108] sm:$0xff] %v1453_v30  ;;  %v1117_v28 = vmul.f32 %v2972_v41, %v1081_v32  ;;  %v1021_v8 = vmul.f32 %v1907_v26, %v1020_v12  ;;  %vm863_vm8 = vweird.f32 %v3166_v63  ;;  %v1937_v30 = vld [vmem:[%s2263_s14 + $0x78] sm:$0xff] }
 0x151   : > { %v1027_v13 = vmul.f32 %v1911_v1, %v3133_v46  ;;  %1912 = vrsqrt.f32 %v3172_v16  ;;  %vm1033_vm9 = vweird.f32 %v1911_v1  ;;  %vm864_vm12 = vmor %vm862_vm10, %vm863_vm8  ;;  %v1067_v58 = vsub.f32 %v1936_v56, %v3074_v43 }
 0x152   : > { %v858_v0 = vmul.f32 %v3166_v63, %v857_v36  ;;  %v1153_v60 = vadd.f32 %v2987_v24, %v1117_v28  ;;  %v1025_v52 = vsel %vm1024_vm7, %v1907_v26, %v1021_v8  ;;  %v1294_v61 = vpop.f32.mrf.mxu0  ;;  %vm1034_vm13 = vmor %vm1032_vm11, %vm1033_vm9  ;;  %vm872_vm15 = vweird.f32 %v3172_v16 }
 0x153   : > { %v1028_v62 = vmul.f32 %v1911_v1, %v1027_v13  ;;  %v1407_v42 = vpop.f32.mrf.mxu1  ;;  %v1098_v20 = vmul.f32 %v1066_v17, %v1025_v52  ;;  %v1295_v59 = vadd.f32 %v1294_v61, %v3042_v37  ;;  %v1051_v51 = vsub.f32 %v1937_v30, %v3112_v45 }
 0x154   : > { %v859_v40 = vmul.f32 0.5, %v858_v0  ;;  %v1408_v2 = vadd.f32 %v1407_v42, %v3076_v27  ;;  %1329 = vmatmul.f32.gmra.mxu0 %v1153_v60  ;;  %1442 = vmatmul.f32.gmra.mxu1 %v1153_v60  ;;  %v1342_v4 = vpop.f32.mrf.mxu2  ;;  %v1455_v34 = vpop.f32.mrf.mxu3 }
 0x155   : > { %v1029_v57 = vmul.f32 0.5, %v1028_v62  ;;  %v1343_v19 = vadd.f32 %v1342_v4, %v3042_v37  ;;  %v1456_v47 = vadd.f32 %v1455_v34, %v3076_v27  ;;  %v1134_v29 = vmul.f32 %v2972_v41, %v1098_v20  ;;  %1502 = vst [vmem:[%s3124_s8 + $0x10] sm:$0xff] %v1295_v59 }
 0x156   : > { %v860_v10 = vsub.f32 1.5, %v859_v40  ;;  %1503 = vst [vmem:[%s3124_s8 + $0x18] sm:$0xff] %v1408_v2 }
 0x157   : > { %v1030_v26 = vsub.f32 1.5, %v1029_v57  ;;  %v1913_v9 = vpop.eup %1912  ;;  %v1170_v31 = vadd.f32 %v2987_v24, %v1134_v29  ;;  %1534 = vst [vmem:[%s3124_s8 + $0x110] sm:$0xff] %v1343_v19 }
 0x158   : > { %v861_v18 = vmul.f32 %v3166_v63, %v860_v10  ;;  %v867_v39 = vmul.f32 %v1913_v9, %v3172_v16  ;;  %1535 = vst [vmem:[%s3124_s8 + $0x118] sm:$0xff] %v1456_v47  ;;  %vm873_vm14 = vweird.f32 %v1913_v9 }
 0x159   : > { %v1031_v38 = vmul.f32 %v1911_v1, %v1030_v26  ;;  %1380 = vmatmul.f32.gmra.mxu2 %v1170_v31  ;;  %1493 = vmatmul.f32.gmra.mxu3 %v1170_v31  ;;  %vm874_vm0 = vmor %vm872_vm15, %vm873_vm14 }
 0x15a   : > { %v865_v48 = vsel %vm864_vm12, %v3166_v63, %v861_v18  ;;  %v868_v5 = vmul.f32 %v1913_v9, %v867_v39 }
 0x15b   : > { %v1082_v7 = vmul.f32 %v1050_v21, %v865_v48  ;;  %v1035_v46 = vsel %vm1034_vm13, %v1911_v1, %v1031_v38 }
 0x15c   : > { %v1099_v14 = vmul.f32 %v1067_v58, %v1035_v46  ;;  %v869_v44 = vmul.f32 0.5, %v868_v5 }
 0x15d   : > { %v1118_v33 = vmul.f32 %v2972_v41, %v1082_v7  ;;  %v1345_v43 = vpop.f32.mrf.mxu2  ;;  %v1458_v49 = vpop.f32.mrf.mxu3 }
 0x15e   : > { %v1135_v25 = vmul.f32 %v2972_v41, %v1099_v14  ;;  %v870_v6 = vsub.f32 1.5, %v869_v44  ;;  %v1346_v53 = vadd.f32 %v1345_v43, %v3042_v37  ;;  %v1459_v15 = vadd.f32 %v1458_v49, %v3076_v27  ;;  %v1297_v22 = vpop.f32.mrf.mxu0  ;;  %v1410_v55 = vpop.f32.mrf.mxu1 }
 0x15f   : > { %v1154_v23 = vadd.f32 %v2987_v24, %v1118_v33  ;;  %v1298_v63 = vadd.f32 %v1297_v22, %v3042_v37  ;;  %v1411_v12 = vadd.f32 %v1410_v55, %v3076_v27 }
 0x160   : > { %v1171_v54 = vadd.f32 %v2987_v24, %v1135_v25  ;;  %v871_v3 = vmul.f32 %v1913_v9, %v870_v6  ;;  %1536 = vst [vmem:[%s3124_s8 + $0x120] sm:$0xff] %v1346_v53 }
 0x161   : > { %1332 = vmatmul.f32.gmra.mxu0 %v1154_v23  ;;  %1445 = vmatmul.f32.gmra.mxu1 %v1154_v23  ;;  %1537 = vst [vmem:[%s3124_s8 + $0x128] sm:$0xff] %v1459_v15 }
 0x162   : > { %1383 = vmatmul.f32.gmra.mxu2 %v1171_v54  ;;  %1496 = vmatmul.f32.gmra.mxu3 %v1171_v54  ;;  %v875_v35 = vsel %vm874_vm0, %v1913_v9, %v871_v3  ;;  %1504 = vst [vmem:[%s3124_s8 + $0x20] sm:$0xff] %v1298_v63 }
 0x163   : > { %v1083_v32 = vmul.f32 %v1051_v51, %v875_v35  ;;  %1505 = vst [vmem:[%s3124_s8 + $0x28] sm:$0xff] %v1411_v12 }
 0x165   : > { %v1119_v45 = vmul.f32 %v2972_v41, %v1083_v32 }
 0x167   : > { %v1155_v1 = vadd.f32 %v2987_v24, %v1119_v45  ;;  %v1348_v36 = vpop.f32.mrf.mxu2  ;;  %v1461_v16 = vpop.f32.mrf.mxu3 }
 0x168   : > { %v1349_v13 = vadd.f32 %v1348_v36, %v3042_v37  ;;  %v1462_v28 = vadd.f32 %v1461_v16, %v3076_v27  ;;  %v1300_v8 = vpop.f32.mrf.mxu0  ;;  %v1413_v50 = vpop.f32.mrf.mxu1 }
 0x169   : > { %1335 = vmatmul.f32.gmra.mxu0 %v1155_v1  ;;  %1448 = vmatmul.f32.gmra.mxu1 %v1155_v1  ;;  %v1301_v17 = vadd.f32 %v1300_v8, %v3042_v37  ;;  %v1414_v0 = vadd.f32 %v1413_v50, %v3076_v27 }
 0x16a   : > { %1538 = vst [vmem:[%s3124_s8 + $0x130] sm:$0xff] %v1349_v13 }
 0x16b   : > { %1539 = vst [vmem:[%s3124_s8 + $0x138] sm:$0xff] %v1462_v28 }
 0x16c   : > { %1506 = vst [vmem:[%s3124_s8 + $0x30] sm:$0xff] %v1301_v17 }
 0x16d   : > { %1507 = vst [vmem:[%s3124_s8 + $0x38] sm:$0xff] %v1414_v0 }
 0x16f   : > { %v1351_v41 = vpop.f32.mrf.mxu2  ;;  %v1464_v24 = vpop.f32.mrf.mxu3 }
 0x170   : > { %v1352_v62 = vadd.f32 %v1351_v41, %v3042_v37  ;;  %v1465_v60 = vadd.f32 %v1464_v24, %v3076_v27 }
 0x172   : > { %v1303_v52 = vpop.f32.mrf.mxu0  ;;  %v1416_v40 = vpop.f32.mrf.mxu1  ;;  %1540 = vst [vmem:[%s3124_s8 + $0x140] sm:$0xff] %v1352_v62 }
 0x173   : > { %v1304_v61 = vadd.f32 %v1303_v52, %v3042_v37  ;;  %v1417_v42 = vadd.f32 %v1416_v40, %v3076_v27  ;;  %1541 = vst [vmem:[%s3124_s8 + $0x148] sm:$0xff] %v1465_v60 }
 0x175   : > { %1508 = vst [vmem:[%s3124_s8 + $0x40] sm:$0xff] %v1304_v61 }
 0x176   : > { %1509 = vst [vmem:[%s3124_s8 + $0x48] sm:$0xff] %v1417_v42 }
 0x17d   : > { %v1354_v20 = vpop.f32.mrf.mxu2  ;;  %v1467_v57 = vpop.f32.mrf.mxu3 }
 0x17e   : > { %v1355_v59 = vadd.f32 %v1354_v20, %v3042_v37  ;;  %v1468_v2 = vadd.f32 %v1467_v57, %v3076_v27  ;;  %v1306_v4 = vpop.f32.mrf.mxu0  ;;  %v1419_v34 = vpop.f32.mrf.mxu1 }
 0x17f   : > { %v1307_v10 = vadd.f32 %v1306_v4, %v3042_v37  ;;  %v1420_v19 = vadd.f32 %v1419_v34, %v3076_v27 }
 0x180   : > { %1542 = vst [vmem:[%s3124_s8 + $0x150] sm:$0xff] %v1355_v59 }
 0x181   : > { %1543 = vst [vmem:[%s3124_s8 + $0x158] sm:$0xff] %v1468_v2 }
 0x182   : > { %1510 = vst [vmem:[%s3124_s8 + $0x50] sm:$0xff] %v1307_v10 }
 0x183   : > { %1511 = vst [vmem:[%s3124_s8 + $0x58] sm:$0xff] %v1420_v19 }
 0x187   : > { %v1357_v47 = vpop.f32.mrf.mxu2  ;;  %v1470_v29 = vpop.f32.mrf.mxu3 }
 0x188   : > { %v1358_v26 = vadd.f32 %v1357_v47, %v3042_v37  ;;  %v1471_v9 = vadd.f32 %v1470_v29, %v3076_v27  ;;  %v1309_v31 = vpop.f32.mrf.mxu0  ;;  %v1422_v18 = vpop.f32.mrf.mxu1 }
 0x189   : > { %v1310_v11 = vadd.f32 %v1309_v31, %v3042_v37  ;;  %v1423_v21 = vadd.f32 %v1422_v18, %v3076_v27 }
 0x18a   : > { %1544 = vst [vmem:[%s3124_s8 + $0x160] sm:$0xff] %v1358_v26 }
 0x18b   : > { %1545 = vst [vmem:[%s3124_s8 + $0x168] sm:$0xff] %v1471_v9 }
 0x18c   : > { %1512 = vst [vmem:[%s3124_s8 + $0x60] sm:$0xff] %v1310_v11 }
 0x18d   : > { %1513 = vst [vmem:[%s3124_s8 + $0x68] sm:$0xff] %v1423_v21 }
 0x18f   : > { %v1360_v39 = vpop.f32.mrf.mxu2  ;;  %v1473_v38 = vpop.f32.mrf.mxu3 }
 0x190   : > { %v1361_v56 = vadd.f32 %v1360_v39, %v3042_v37  ;;  %v1474_v58 = vadd.f32 %v1473_v38, %v3076_v27 }
 0x192   : > { %v1312_v48 = vpop.f32.mrf.mxu0  ;;  %v1425_v5 = vpop.f32.mrf.mxu1  ;;  %1546 = vst [vmem:[%s3124_s8 + $0x170] sm:$0xff] %v1361_v56 }
 0x193   : > { %v1313_v7 = vadd.f32 %v1312_v48, %v3042_v37  ;;  %v1426_v46 = vadd.f32 %v1425_v5, %v3076_v27  ;;  %1547 = vst [vmem:[%s3124_s8 + $0x178] sm:$0xff] %v1474_v58 }
 0x195   : > { %1514 = vst [vmem:[%s3124_s8 + $0x70] sm:$0xff] %v1313_v7 }
 0x196   : > { %1515 = vst [vmem:[%s3124_s8 + $0x78] sm:$0xff] %v1426_v46 }
 0x19d   : > { %v1363_v14 = vpop.f32.mrf.mxu2  ;;  %v1476_v44 = vpop.f32.mrf.mxu3 }
 0x19e   : > { %v1364_v33 = vadd.f32 %v1363_v14, %v3042_v37  ;;  %v1477_v25 = vadd.f32 %v1476_v44, %v3076_v27  ;;  %v1315_v6 = vpop.f32.mrf.mxu0  ;;  %v1428_v43 = vpop.f32.mrf.mxu1 }
 0x19f   : > { %v1316_v49 = vadd.f32 %v1315_v6, %v3042_v37  ;;  %v1429_v23 = vadd.f32 %v1428_v43, %v3076_v27 }
 0x1a0   : > { %1548 = vst [vmem:[%s3124_s8 + $0x180] sm:$0xff] %v1364_v33 }
 0x1a1   : > { %1549 = vst [vmem:[%s3124_s8 + $0x188] sm:$0xff] %v1477_v25 }
 0x1a2   : > { %1516 = vst [vmem:[%s3124_s8 + $0x80] sm:$0xff] %v1316_v49 }
 0x1a3   : > { %1517 = vst [vmem:[%s3124_s8 + $0x88] sm:$0xff] %v1429_v23 }
 0x1a7   : > { %v1366_v53 = vpop.f32.mrf.mxu2  ;;  %v1479_v15 = vpop.f32.mrf.mxu3 }
 0x1a8   : > { %v1367_v54 = vadd.f32 %v1366_v53, %v3042_v37  ;;  %v1480_v22 = vadd.f32 %v1479_v15, %v3076_v27  ;;  %v1318_v55 = vpop.f32.mrf.mxu0  ;;  %v1431_v3 = vpop.f32.mrf.mxu1 }
 0x1a9   : > { %v1319_v30 = vadd.f32 %v1318_v55, %v3042_v37  ;;  %v1432_v51 = vadd.f32 %v1431_v3, %v3076_v27 }
 0x1aa   : > { %1550 = vst [vmem:[%s3124_s8 + $0x190] sm:$0xff] %v1367_v54 }
 0x1ab   : > { %1551 = vst [vmem:[%s3124_s8 + $0x198] sm:$0xff] %v1480_v22 }
 0x1ac   : > { %1518 = vst [vmem:[%s3124_s8 + $0x90] sm:$0xff] %v1319_v30 }
 0x1ad   : > { %1519 = vst [vmem:[%s3124_s8 + $0x98] sm:$0xff] %v1432_v51 }
 0x1af   : > { %v1369_v63 = vpop.f32.mrf.mxu2  ;;  %v1482_v12 = vpop.f32.mrf.mxu3 }
 0x1b0   : > { %v1370_v35 = vadd.f32 %v1369_v63, %v3042_v37  ;;  %v1483_v32 = vadd.f32 %v1482_v12, %v3076_v27 }
 0x1b2   : > { %v1321_v45 = vpop.f32.mrf.mxu0  ;;  %v1434_v1 = vpop.f32.mrf.mxu1  ;;  %1552 = vst [vmem:[%s3124_s8 + $0x1a0] sm:$0xff] %v1370_v35 }
 0x1b3   : > { %v1322_v36 = vadd.f32 %v1321_v45, %v3042_v37  ;;  %v1435_v16 = vadd.f32 %v1434_v1, %v3076_v27  ;;  %1553 = vst [vmem:[%s3124_s8 + $0x1a8] sm:$0xff] %v1483_v32 }
 0x1b5   : > { %1520 = vst [vmem:[%s3124_s8 + $0xa0] sm:$0xff] %v1322_v36 }
 0x1b6   : > { %1521 = vst [vmem:[%s3124_s8 + $0xa8] sm:$0xff] %v1435_v16 }
 0x1bd   : > { %v1372_v13 = vpop.f32.mrf.mxu2  ;;  %v1485_v28 = vpop.f32.mrf.mxu3 }
 0x1be   : > { %v1373_v8 = vadd.f32 %v1372_v13, %v3042_v37  ;;  %v1486_v50 = vadd.f32 %v1485_v28, %v3076_v27  ;;  %v1324_v17 = vpop.f32.mrf.mxu0  ;;  %v1437_v0 = vpop.f32.mrf.mxu1 }
 0x1bf   : > { %v1325_v41 = vadd.f32 %v1324_v17, %v3042_v37  ;;  %v1438_v24 = vadd.f32 %v1437_v0, %v3076_v27 }
 0x1c0   : > { %1554 = vst [vmem:[%s3124_s8 + $0x1b0] sm:$0xff] %v1373_v8 }
 0x1c1   : > { %1555 = vst [vmem:[%s3124_s8 + $0x1b8] sm:$0xff] %v1486_v50 }
 0x1c2   : > { %1522 = vst [vmem:[%s3124_s8 + $0xb0] sm:$0xff] %v1325_v41 }
 0x1c3   : > { %1523 = vst [vmem:[%s3124_s8 + $0xb8] sm:$0xff] %v1438_v24 }
 0x1c7   : > { %v1375_v62 = vpop.f32.mrf.mxu2  ;;  %v1488_v60 = vpop.f32.mrf.mxu3 }
 0x1c8   : > { %v1376_v52 = vadd.f32 %v1375_v62, %v3042_v37  ;;  %v1489_v40 = vadd.f32 %v1488_v60, %v3076_v27  ;;  %v1327_v61 = vpop.f32.mrf.mxu0  ;;  %v1440_v42 = vpop.f32.mrf.mxu1 }
 0x1c9   : > { %v1328_v20 = vadd.f32 %v1327_v61, %v3042_v37  ;;  %v1441_v57 = vadd.f32 %v1440_v42, %v3076_v27 }
 0x1ca   : > { %1556 = vst [vmem:[%s3124_s8 + $0x1c0] sm:$0xff] %v1376_v52 }
 0x1cb   : > { %1557 = vst [vmem:[%s3124_s8 + $0x1c8] sm:$0xff] %v1489_v40 }
 0x1cc   : > { %1524 = vst [vmem:[%s3124_s8 + $0xc0] sm:$0xff] %v1328_v20 }
 0x1cd   : > { %1525 = vst [vmem:[%s3124_s8 + $0xc8] sm:$0xff] %v1441_v57 }
 0x1d1   : > { %v1330_v59 = vpop.f32.mrf.mxu0  ;;  %v1443_v2 = vpop.f32.mrf.mxu1 }
 0x1d2   : > { %v1331_v4 = vadd.f32 %v1330_v59, %v3042_v37  ;;  %v1444_v34 = vadd.f32 %v1443_v2, %v3076_v27  ;;  %v1378_v10 = vpop.f32.mrf.mxu2  ;;  %v1491_v19 = vpop.f32.mrf.mxu3 }
 0x1d3   : > { %v1379_v47 = vadd.f32 %v1378_v10, %v3042_v37  ;;  %v1492_v29 = vadd.f32 %v1491_v19, %v3076_v27 }
 0x1d4   : > { %1526 = vst [vmem:[%s3124_s8 + $0xd0] sm:$0xff] %v1331_v4 }
 0x1d5   : > { %1527 = vst [vmem:[%s3124_s8 + $0xd8] sm:$0xff] %v1444_v34 }
 0x1d6   : > { %1558 = vst [vmem:[%s3124_s8 + $0x1d0] sm:$0xff] %v1379_v47 }
 0x1d7   : > { %1559 = vst [vmem:[%s3124_s8 + $0x1d8] sm:$0xff] %v1492_v29 }
 0x1dc   : > { %v1381_v26 = vpop.f32.mrf.mxu2  ;;  %v1494_v9 = vpop.f32.mrf.mxu3 }
 0x1dd   : > { %v1382_v31 = vadd.f32 %v1381_v26, %v3042_v37  ;;  %v1495_v18 = vadd.f32 %v1494_v9, %v3076_v27 }
 0x1de   : > { %v1333_v11 = vpop.f32.mrf.mxu0  ;;  %v1446_v21 = vpop.f32.mrf.mxu1 }
 0x1df   : > { %v1334_v39 = vadd.f32 %v1333_v11, %v3042_v37  ;;  %v1447_v38 = vadd.f32 %v1446_v21, %v3076_v27  ;;  %1560 = vst [vmem:[%s3124_s8 + $0x1e0] sm:$0xff] %v1382_v31 }
 0x1e0   : > { %1561 = vst [vmem:[%s3124_s8 + $0x1e8] sm:$0xff] %v1495_v18 }
 0x1e1   : > { %1528 = vst [vmem:[%s3124_s8 + $0xe0] sm:$0xff] %v1334_v39 }
 0x1e2   : > { %1529 = vst [vmem:[%s3124_s8 + $0xe8] sm:$0xff] %v1447_v38 }
 0x1e5   : > { %v1384_v56 = vpop.f32.mrf.mxu2  ;;  %v1497_v58 = vpop.f32.mrf.mxu3 }
 0x1e6   : > { %v1385_v48 = vadd.f32 %v1384_v56, %v3042_v37  ;;  %v1498_v5 = vadd.f32 %v1497_v58, %v3076_v27  ;;  %v1336_v7 = vpop.f32.mrf.mxu0  ;;  %v1449_v46 = vpop.f32.mrf.mxu1 }
 0x1e7   : > { %v1337_v14 = vadd.f32 %v1336_v7, %v3042_v37  ;;  %v1450_v44 = vadd.f32 %v1449_v46, %v3076_v27 }
 0x1e8   : > { %1562 = vst [vmem:[%s3124_s8 + $0x1f0] sm:$0xff] %v1385_v48 }
 0x1e9   : > { %1563 = vst [vmem:[%s3124_s8 + $0x1f8] sm:$0xff] %v1498_v5 }
 0x1ea   : > { %1530 = vst [vmem:[%s3124_s8 + $0xf0] sm:$0xff] %v1337_v14 }
 0x1eb   : > { %1531 = vst [vmem:[%s3124_s8 + $0xf8] sm:$0xff] %v1450_v44 }
 0x1ec   : > { %2055 = shalt.err (!%p2052_p1)
}
 0x1ed   : > { %s2123_s1 = smov 256   ;;  %s2124_s29 = smov 16  }
 0x1ee   : > { %1766 = dma.vmem_to_hbm [thread:$0]  (%p2207_p8), %s1581_s25, 8192, %s1583_s7, %s1565_s21, %s2123_s1, %s2123_s1, %s2124_s29  }
 0x1ef PF: > { %s3415_s10 = sld [smem:[#allocation13_spill]]  ;;  %s1597_s16 = sand.u32 1, %s2094_s18  }
 0x1f0   : > { %p1780_p2 = pnand %p1706_p13, %p2211_p9  ;;  %s1598_s8 = scalar_lea.sflag [#allocation5], %s1597_s16 }
 0x1f2   : > { %p1781_p4 = pneg %p1780_p2 }
 0x1f4   : > { %2089 = dma.done.wait (%p1781_p4), %s1598_s8, 8192  }
 0x1f5   : > { %2091 = vsyncadd (%p1781_p4), %s1598_s8, 4294959104  ;;  %s22_s23 = sadd.s32 1, %s3415_s10   ;;  %s3416_s18 = smov %s2098_s19 }
 0x1f6   : > { %p19_p6 = scmp.ge.s32.totalorder %s22_s23, 4   ;;  %s3417_s19 = smov %s2102_s20 }
 0x1f7   : > { %s3418_s20 = smov %s2252_s24  ;;  %s3419_s21 = smov %s2110_s22 }
 0x1f8   : > { %s3420_s22 = smov %s3422_s11  ;;  %21 = sbr.rel (!%p19_p6) target bundleno = 10 (0xa), region = 101 }
 0x1fd   :  { %1604 = vsyncpa [#allocation4], 1 }
 0x1fe   :  { %1606 = vsyncpa [#allocation4 + $0x1], 1 }
 0x1ff   :  { %1607 = vsyncpa [#allocation7], 1 }
 0x200   :  { %1608 = vsyncpa [#allocation5], 1 }
 0x201   :  { %1610 = vsyncpa [#allocation5 + $0x1], 1 }

</bundles_post_ra>
